<compile_context>
chip_gen: v6e
topology: v6e:2x2x1
jax: 0.10.0
libtpu: 0.0.40
codegen_flags: <defaults>
</compile_context>

<pallas_src>
import jax
import jax.numpy as jnp
from jax.experimental import pallas as pl
from jax.experimental.pallas import tpu as pltpu

VOCAB = 2110
IN_DIM = 16           # cfg.in_dim
HIDDEN_DIMS = [32]    # cfg.hidden_dims
OUT_DIM = 3           # hidden_channels = cfg.hidden_dims + [3]
GRID_SIZE = 5         # cfg.grid
SPLINE_K = 3          # cfg.k
LN_EPS = 1e-5

GRID_H = 2.0 / GRID_SIZE                       # uniform grid spacing on [-1, 1]
NUM_KNOTS = GRID_SIZE + 2 * SPLINE_K + 1       # 12
NUM_BASES = GRID_SIZE + SPLINE_K               # 8
KNOTS = [(-1.0 + (j - SPLINE_K) * GRID_H) for j in range(NUM_KNOTS)]  # python floats

TILE_N_MAX = 1024     # ~<2 MiB of activations/LHS per tile; well under scoped VMEM


def _round_up(x, m):
    return (x + m - 1) // m * m


# ---------------------------------------------------------------------------
# Closed-form uniform cubic B-spline bases, written straight into a bf16 VMEM
# scratch alongside silu(x).  x is (Cin, Tn) f32 with N on the lane axis.
# ---------------------------------------------------------------------------
def _fill_lhs(lhs_ref, x, cin):
    """Write rows [0:9*cin] of lhs_ref with [silu(x); B_0(x); ...; B_7(x)] (bf16).

    For x in knot segment m (knot_m <= x < knot_{m+1}), local t = (x-knot_m)/h,
    only bases m-3..m are non-zero and take the 4 cardinal cubic pieces; x
    outside the knot span [-2.2, 2.2) gets all-zero bases.  This exactly matches
    the half-open-interval Cox-de Boor recursion used by efficient-KAN (each of
    the 8 retained bases has its full knot support inside the 12-knot vector).
    """
    lhs_ref[0:cin, :] = (x * jax.nn.sigmoid(x)).astype(jnp.bfloat16)

    u = (x - KNOTS[0]) * (1.0 / GRID_H)         # global knot coordinate
    m = jnp.floor(u)                            # segment index (exact float int)
    t = u - m                                   # local coordinate in [0, 1)
    t2 = t * t
    t3 = t2 * t
    p0 = t3 * (1.0 / 6.0)                       # piece s=0  (basis j == m)
    p1 = (1.0 / 6.0) + 0.5 * (t + t2 - t3)      # piece s=1  (basis j == m-1)
    p2 = (2.0 / 3.0) + (0.5 * t3 - t2)          # piece s=2  (basis j == m-2)
    p3 = 1.0 - p0 - p1 - p2                     # piece s=3  (partition of unity)
    zero = jnp.zeros_like(x)                    # hoisted (no per-slot broadcast)

    for j in range(NUM_BASES):
        bj = jnp.where(m == float(j), p0,
             jnp.where(m == float(j + 1), p1,
             jnp.where(m == float(j + 2), p2,
             jnp.where(m == float(j + 3), p3, zero))))
        lhs_ref[cin * (1 + j):cin * (2 + j), :] = bj.astype(jnp.bfloat16)


# ---------------------------------------------------------------------------
# Fused kernel: both KAN layers + interleaved LayerNorm, one tile of N per step.
# ---------------------------------------------------------------------------
def _make_fused_kernel(layer_dims, with_ln_flags):
    def kernel(x_ref, *refs):
        lhs_ref = refs[-1]                      # ((NB+1)*48, Tn) bf16 scratch
        out_ref = refs[-2]
        prefs = refs[:-2]
        x = x_ref[...]                          # (48, Tn) f32, N on lanes
        ri = 0
        for li, (cin, cout) in enumerate(layer_dims):
            w = prefs[ri][...]                  # (cout, (NB+1)*cin) bf16
            ri += 1
            _fill_lhs(lhs_ref, x, cin)
            y = jnp.dot(w, lhs_ref[0:(NUM_BASES + 1) * cin, :],
                        preferred_element_type=jnp.float32)    # (cout, Tn) f32
            if with_ln_flags[li]:
                gamma = prefs[ri][...]          # (cout, 1)
                beta = prefs[ri + 1][...]
                ri += 2
                mean = jnp.mean(y, axis=0, keepdims=True)
                var = jnp.mean(jnp.square(y - mean), axis=0, keepdims=True)
                y = (y - mean) * jax.lax.rsqrt(var + LN_EPS)
                y = y * gamma + beta
            x = y
        out_ref[...] = x.astype(out_ref.dtype)

    return kernel


# ---------------------------------------------------------------------------
# Parameter construction (synthetic, deterministic)
# ---------------------------------------------------------------------------
def init_params(key):
    dims = [3 * IN_DIM] + HIDDEN_DIMS + [OUT_DIM]
    keys = jax.random.split(key, 1 + 2 * (len(dims) - 1))
    params = {"embed": jax.random.normal(keys[0], (VOCAB, IN_DIM), jnp.float32)}

    layers = []
    for li, (cin, cout) in enumerate(zip(dims[:-1], dims[1:])):
        kb = keys[1 + 2 * li]
        ks = keys[2 + 2 * li]
        base_w = jax.random.normal(kb, (cout, cin), jnp.float32) / jnp.sqrt(
            jnp.float32(cin))
        spline_w = jax.random.normal(ks, (cout, cin, NUM_BASES), jnp.float32) * 0.1
        # Fuse base + spline weights into one matrix matching the kernel's LHS
        # row order: [silu block (cin), basis0 block (cin), ..., basis7 block].
        # NOTE: folding the standalone spline scaler in is exact for this init;
        # with trained weights apply the scaler before this cast.
        spl_flat = jnp.transpose(spline_w, (0, 2, 1)).reshape(cout, NUM_BASES * cin)
        w_fused = jnp.concatenate([base_w, spl_flat], axis=1)    # (cout, 9*cin)
        layer = {"w": w_fused.astype(jnp.bfloat16)}
        if li < len(dims) - 2:    # LayerNorm only between layers (last_norm=False)
            layer["gamma"] = jnp.ones((cout, 1), jnp.float32)
            layer["beta"] = jnp.zeros((cout, 1), jnp.float32)
        layers.append(layer)
    params["layers"] = layers
    return params


# ---------------------------------------------------------------------------
# Full forward
# ---------------------------------------------------------------------------
def bb_kan_forward(tokens, params):
    n, l = tokens.shape
    assert l == 3

    # Embedding row-gather + one-time transpose to the lane-dense (features, N)
    # layout used by the fused kernel.
    # TODO(synk): for large N, fuse the gather/transpose into the kernel
    # (scalar-prefetch token ids + in-kernel gather of the 135 KiB VMEM-resident
    # table) to remove this (N, 48) HBM round trip; jnp.take is the portable path.
    emb = jnp.take(params["embed"], tokens.reshape(-1).astype(jnp.int32), axis=0)
    x_t = emb.reshape(n, l * IN_DIM).T                     # (48, N), N on lanes

    # Tile choice: as large as comfortably fits VMEM, but always >= 2 grid steps
    # when N permits so both v7x TensorCores get work (megacore sharding).
    n_pad0 = _round_up(max(n, 1), 128)
    if n_pad0 >= 2 * TILE_N_MAX:
        tile_n = TILE_N_MAX
    else:
        tile_n = max(128, _round_up((n_pad0 + 1) // 2, 128))
    n_pad = _round_up(n_pad0, tile_n)
    if n_pad != n:
        x_t = jnp.pad(x_t, ((0, 0), (0, n_pad - n)))

    num_layers = len(params["layers"])
    with_ln_flags = [li < num_layers - 1 for li in range(num_layers)]
    dims = [l * IN_DIM] + HIDDEN_DIMS + [OUT_DIM]
    layer_dims = list(zip(dims[:-1], dims[1:]))
    kernel = _make_fused_kernel(layer_dims, with_ln_flags)

    args = [x_t]
    in_specs = [pl.BlockSpec((l * IN_DIM, tile_n), lambda i: (0, i))]
    for li, layer in enumerate(params["layers"]):
        cout, kdim = layer["w"].shape
        args.append(layer["w"])
        in_specs.append(pl.BlockSpec((cout, kdim), lambda i: (0, 0)))
        if with_ln_flags[li]:
            args += [layer["gamma"], layer["beta"]]
            in_specs += [pl.BlockSpec((cout, 1), lambda i: (0, 0))] * 2

    lhs_rows = (NUM_BASES + 1) * max(cin for cin, _ in layer_dims)   # 432

    out_t = pl.pallas_call(
        kernel,
        out_shape=jax.ShapeDtypeStruct((OUT_DIM, n_pad), jnp.float32),
        grid=(n_pad // tile_n,),
        in_specs=in_specs,
        out_specs=pl.BlockSpec((OUT_DIM, tile_n), lambda i: (0, i)),
        scratch_shapes=[pltpu.VMEM((lhs_rows, tile_n), jnp.bfloat16)],
        compiler_params=pltpu.CompilerParams(
            dimension_semantics=("parallel",),
            vmem_limit_bytes=32 * 1024 * 1024),
    )(*args)

    return out_t[:, :n].T                                  # (N, 3) f32


# ---------------------------------------------------------------------------
# Pure-JAX reference (Cox-de Boor recursion) used only for the self-check.
# It mirrors the kernel's bf16 quantization of weights / silu / bases so the
# comparison isolates the closed-form rewrite and kernel plumbing.
# ---------------------------------------------------------------------------
def _ref_bsplines(x):
    knots = jnp.asarray(KNOTS, dtype=jnp.float32)
    xe = x[..., None]
    b = ((xe >= knots[:-1]) & (xe < knots[1:])).astype(jnp.float32)
    for p in range(1, SPLINE_K + 1):
        left = (xe - knots[:-(p + 1)]) / (knots[p:-1] - knots[:-(p + 1)]) * b[..., :-1]
        right = (knots[p + 1:] - xe) / (knots[p + 1:] - knots[1:-p]) * b[..., 1:]
        b = left + right
    return b                                               # (..., NUM_BASES)


def ref_forward(tokens, params):
    hp = jax.lax.Precision.HIGHEST
    emb = jnp.take(params["embed"], tokens.reshape(-1).astype(jnp.int32), axis=0)
    x = emb.reshape(tokens.shape[0], 3 * IN_DIM)
    num_layers = len(params["layers"])
    for li, layer in enumerate(params["layers"]):
        w = layer["w"].astype(jnp.float32)                 # bf16-quantized values
        cin = x.shape[1]
        silu = (x * jax.nn.sigmoid(x)).astype(jnp.bfloat16).astype(jnp.float32)
        bas = _ref_bsplines(x).astype(jnp.bfloat16).astype(jnp.float32)
        y = jnp.einsum("nc,oc->no", silu, w[:, :cin], precision=hp)
        for j in range(NUM_BASES):
            wj = w[:, cin * (1 + j):cin * (2 + j)]
            y = y + jnp.einsum("nc,oc->no", bas[..., j], wj, precision=hp)
        if li < num_layers - 1:
            mean = y.mean(axis=1, keepdims=True)
            var = ((y - mean) ** 2).mean(axis=1, keepdims=True)
            y = (y - mean) / jnp.sqrt(var + LN_EPS)
        x = y
    return x


if __name__ == "__main__":
    key = jax.random.PRNGKey(0)
    pkey, tkey = jax.random.split(key)
    params = init_params(pkey)

    N = 8
    tokens = jax.random.randint(tkey, (N, 3), 0, VOCAB, dtype=jnp.int32)

    out = jax.jit(bb_kan_forward)(tokens, params)
    out = jax.block_until_ready(out)
    assert out.shape == (N, OUT_DIM) and out.dtype == jnp.float32

    ref = ref_forward(tokens, params)
    err = float(jnp.max(jnp.abs(out - ref)))
    assert bool(jnp.isfinite(out).all()) and err < 5e-2, f"max abs err {err}"
    print("KERNEL_OK")
</pallas_src>

<mosaic_0001>
module attributes {stable_mosaic.version = 11 : i64} {
  func.func @kernel(%arg0: i32, %arg1: memref<48x128xf32, #tpu.memory_space<vmem>>, %arg2: memref<32x432xbf16, #tpu.memory_space<vmem>>, %arg3: memref<32x1xf32, #tpu.memory_space<vmem>>, %arg4: memref<32x1xf32, #tpu.memory_space<vmem>>, %arg5: memref<3x288xbf16, #tpu.memory_space<vmem>>, %arg6: memref<3x128xf32, #tpu.memory_space<vmem>>, %arg7: memref<432x128xbf16, #tpu.memory_space<vmem>>) attributes {dimension_semantics = [#tpu.dimension_semantics<parallel>], iteration_bounds = array<i64: 1>, scalar_prefetch = 0 : i64, scratch_operands = 1 : i64, tpu.core_type = #tpu.core_type<tc>, window_params = [{transform_indices = @transform_0, window_bounds = array<i64: 48, 128>}, {pipeline_mode = #tpu.pipeline_mode<synchronous>, transform_indices = @transform_1, window_bounds = array<i64: 32, 432>}, {pipeline_mode = #tpu.pipeline_mode<synchronous>, transform_indices = @transform_2, window_bounds = array<i64: 32, 1>}, {pipeline_mode = #tpu.pipeline_mode<synchronous>, transform_indices = @transform_3, window_bounds = array<i64: 32, 1>}, {pipeline_mode = #tpu.pipeline_mode<synchronous>, transform_indices = @transform_4, window_bounds = array<i64: 3, 288>}, {transform_indices = @transform_5, window_bounds = array<i64: 3, 128>}]} {
    %c0 = arith.constant 0 : index
    %c0_0 = arith.constant 0 : index
    %0 = vector.load %arg1[%c0, %c0_0] : memref<48x128xf32, #tpu.memory_space<vmem>>, vector<48x128xf32>
    %c0_1 = arith.constant 0 : index
    %c0_2 = arith.constant 0 : index
    %1 = vector.load %arg2[%c0_1, %c0_2] : memref<32x432xbf16, #tpu.memory_space<vmem>>, vector<32x432xbf16>
    %2 = arith.negf %0 : vector<48x128xf32>
    %3 = math.exp %2 : vector<48x128xf32>
    %cst = arith.constant 1.000000e+00 : f32
    %4 = vector.broadcast %cst : f32 to vector<48x128xf32>
    %5 = arith.addf %4, %3 : vector<48x128xf32>
    %6 = arith.divf %4, %5 : vector<48x128xf32>
    %7 = arith.mulf %0, %6 : vector<48x128xf32>
    %8 = arith.truncf %7 : vector<48x128xf32> to vector<48x128xbf16>
    %c0_3 = arith.constant 0 : index
    %c0_4 = arith.constant 0 : index
    %9 = vector.load %arg7[%c0_3, %c0_4] : memref<432x128xbf16, #tpu.memory_space<vmem>>, vector<48x128xbf16>
    tpu.vector_store %arg7[%c0_3, %c0_4], %8 {strides = array<i32>} : memref<432x128xbf16, #tpu.memory_space<vmem>>, vector<48x128xbf16>,
    %cst_5 = arith.constant -2.200000e+00 : f32
    %10 = vector.broadcast %cst_5 : f32 to vector<48x128xf32>
    %11 = arith.subf %0, %10 : vector<48x128xf32>
    %cst_6 = arith.constant 2.500000e+00 : f32
    %12 = vector.broadcast %cst_6 : f32 to vector<48x128xf32>
    %13 = arith.mulf %11, %12 : vector<48x128xf32>
    %14 = math.floor %13 : vector<48x128xf32>
    %15 = arith.subf %13, %14 : vector<48x128xf32>
    %16 = arith.mulf %15, %15 : vector<48x128xf32>
    %17 = arith.mulf %16, %15 : vector<48x128xf32>
    %cst_7 = arith.constant 0.166666672 : f32
    %18 = vector.broadcast %cst_7 : f32 to vector<48x128xf32>
    %19 = arith.mulf %17, %18 : vector<48x128xf32>
    %20 = arith.addf %15, %16 : vector<48x128xf32>
    %21 = arith.subf %20, %17 : vector<48x128xf32>
    %cst_8 = arith.constant 5.000000e-01 : f32
    %22 = vector.broadcast %cst_8 : f32 to vector<48x128xf32>
    %23 = arith.mulf %22, %21 : vector<48x128xf32>
    %cst_9 = arith.constant 0.166666672 : f32
    %24 = vector.broadcast %cst_9 : f32 to vector<48x128xf32>
    %25 = arith.addf %24, %23 : vector<48x128xf32>
    %cst_10 = arith.constant 5.000000e-01 : f32
    %26 = vector.broadcast %cst_10 : f32 to vector<48x128xf32>
    %27 = arith.mulf %26, %17 : vector<48x128xf32>
    %28 = arith.subf %27, %16 : vector<48x128xf32>
    %cst_11 = arith.constant 0.666666686 : f32
    %29 = vector.broadcast %cst_11 : f32 to vector<48x128xf32>
    %30 = arith.addf %29, %28 : vector<48x128xf32>
    %cst_12 = arith.constant 1.000000e+00 : f32
    %31 = vector.broadcast %cst_12 : f32 to vector<48x128xf32>
    %32 = arith.subf %31, %19 : vector<48x128xf32>
    %33 = arith.subf %32, %25 : vector<48x128xf32>
    %34 = arith.subf %33, %30 : vector<48x128xf32>
    %cst_13 = arith.constant 0.000000e+00 : f32
    %35 = vector.broadcast %cst_13 : f32 to vector<48x128xf32>
    %cst_14 = arith.constant 0.000000e+00 : f32
    %36 = vector.broadcast %cst_14 : f32 to vector<48x128xf32>
    %37 = arith.cmpf oeq, %14, %36 : vector<48x128xf32>
    %cst_15 = arith.constant 1.000000e+00 : f32
    %38 = vector.broadcast %cst_15 : f32 to vector<48x128xf32>
    %39 = arith.cmpf oeq, %14, %38 : vector<48x128xf32>
    %cst_16 = arith.constant 2.000000e+00 : f32
    %40 = vector.broadcast %cst_16 : f32 to vector<48x128xf32>
    %41 = arith.cmpf oeq, %14, %40 : vector<48x128xf32>
    %cst_17 = arith.constant 3.000000e+00 : f32
    %42 = vector.broadcast %cst_17 : f32 to vector<48x128xf32>
    %43 = arith.cmpf oeq, %14, %42 : vector<48x128xf32>
    %44 = arith.select %43, %34, %35 : vector<48x128xi1>, vector<48x128xf32>
    %45 = arith.select %41, %30, %44 : vector<48x128xi1>, vector<48x128xf32>
    %46 = arith.select %39, %25, %45 : vector<48x128xi1>, vector<48x128xf32>
    %47 = arith.select %37, %19, %46 : vector<48x128xi1>, vector<48x128xf32>
    %48 = arith.truncf %47 : vector<48x128xf32> to vector<48x128xbf16>
    %c48 = arith.constant 48 : index
    %c0_18 = arith.constant 0 : index
    %49 = vector.load %arg7[%c48, %c0_18] : memref<432x128xbf16, #tpu.memory_space<vmem>>, vector<48x128xbf16>
    tpu.vector_store %arg7[%c48, %c0_18], %48 {strides = array<i32>} : memref<432x128xbf16, #tpu.memory_space<vmem>>, vector<48x128xbf16>,
    %cst_19 = arith.constant 1.000000e+00 : f32
    %50 = vector.broadcast %cst_19 : f32 to vector<48x128xf32>
    %51 = arith.cmpf oeq, %14, %50 : vector<48x128xf32>
    %cst_20 = arith.constant 2.000000e+00 : f32
    %52 = vector.broadcast %cst_20 : f32 to vector<48x128xf32>
    %53 = arith.cmpf oeq, %14, %52 : vector<48x128xf32>
    %cst_21 = arith.constant 3.000000e+00 : f32
    %54 = vector.broadcast %cst_21 : f32 to vector<48x128xf32>
    %55 = arith.cmpf oeq, %14, %54 : vector<48x128xf32>
    %cst_22 = arith.constant 4.000000e+00 : f32
    %56 = vector.broadcast %cst_22 : f32 to vector<48x128xf32>
    %57 = arith.cmpf oeq, %14, %56 : vector<48x128xf32>
    %58 = arith.select %57, %34, %35 : vector<48x128xi1>, vector<48x128xf32>
    %59 = arith.select %55, %30, %58 : vector<48x128xi1>, vector<48x128xf32>
    %60 = arith.select %53, %25, %59 : vector<48x128xi1>, vector<48x128xf32>
    %61 = arith.select %51, %19, %60 : vector<48x128xi1>, vector<48x128xf32>
    %62 = arith.truncf %61 : vector<48x128xf32> to vector<48x128xbf16>
    %c96 = arith.constant 96 : index
    %c0_23 = arith.constant 0 : index
    %63 = vector.load %arg7[%c96, %c0_23] : memref<432x128xbf16, #tpu.memory_space<vmem>>, vector<48x128xbf16>
    tpu.vector_store %arg7[%c96, %c0_23], %62 {strides = array<i32>} : memref<432x128xbf16, #tpu.memory_space<vmem>>, vector<48x128xbf16>,
    %cst_24 = arith.constant 2.000000e+00 : f32
    %64 = vector.broadcast %cst_24 : f32 to vector<48x128xf32>
    %65 = arith.cmpf oeq, %14, %64 : vector<48x128xf32>
    %cst_25 = arith.constant 3.000000e+00 : f32
    %66 = vector.broadcast %cst_25 : f32 to vector<48x128xf32>
    %67 = arith.cmpf oeq, %14, %66 : vector<48x128xf32>
    %cst_26 = arith.constant 4.000000e+00 : f32
    %68 = vector.broadcast %cst_26 : f32 to vector<48x128xf32>
    %69 = arith.cmpf oeq, %14, %68 : vector<48x128xf32>
    %cst_27 = arith.constant 5.000000e+00 : f32
    %70 = vector.broadcast %cst_27 : f32 to vector<48x128xf32>
    %71 = arith.cmpf oeq, %14, %70 : vector<48x128xf32>
    %72 = arith.select %71, %34, %35 : vector<48x128xi1>, vector<48x128xf32>
    %73 = arith.select %69, %30, %72 : vector<48x128xi1>, vector<48x128xf32>
    %74 = arith.select %67, %25, %73 : vector<48x128xi1>, vector<48x128xf32>
    %75 = arith.select %65, %19, %74 : vector<48x128xi1>, vector<48x128xf32>
    %76 = arith.truncf %75 : vector<48x128xf32> to vector<48x128xbf16>
    %c144 = arith.constant 144 : index
    %c0_28 = arith.constant 0 : index
    %77 = vector.load %arg7[%c144, %c0_28] : memref<432x128xbf16, #tpu.memory_space<vmem>>, vector<48x128xbf16>
    tpu.vector_store %arg7[%c144, %c0_28], %76 {strides = array<i32>} : memref<432x128xbf16, #tpu.memory_space<vmem>>, vector<48x128xbf16>,
    %cst_29 = arith.constant 3.000000e+00 : f32
    %78 = vector.broadcast %cst_29 : f32 to vector<48x128xf32>
    %79 = arith.cmpf oeq, %14, %78 : vector<48x128xf32>
    %cst_30 = arith.constant 4.000000e+00 : f32
    %80 = vector.broadcast %cst_30 : f32 to vector<48x128xf32>
    %81 = arith.cmpf oeq, %14, %80 : vector<48x128xf32>
    %cst_31 = arith.constant 5.000000e+00 : f32
    %82 = vector.broadcast %cst_31 : f32 to vector<48x128xf32>
    %83 = arith.cmpf oeq, %14, %82 : vector<48x128xf32>
    %cst_32 = arith.constant 6.000000e+00 : f32
    %84 = vector.broadcast %cst_32 : f32 to vector<48x128xf32>
    %85 = arith.cmpf oeq, %14, %84 : vector<48x128xf32>
    %86 = arith.select %85, %34, %35 : vector<48x128xi1>, vector<48x128xf32>
    %87 = arith.select %83, %30, %86 : vector<48x128xi1>, vector<48x128xf32>
    %88 = arith.select %81, %25, %87 : vector<48x128xi1>, vector<48x128xf32>
    %89 = arith.select %79, %19, %88 : vector<48x128xi1>, vector<48x128xf32>
    %90 = arith.truncf %89 : vector<48x128xf32> to vector<48x128xbf16>
    %c192 = arith.constant 192 : index
    %c0_33 = arith.constant 0 : index
    %91 = vector.load %arg7[%c192, %c0_33] : memref<432x128xbf16, #tpu.memory_space<vmem>>, vector<48x128xbf16>
    tpu.vector_store %arg7[%c192, %c0_33], %90 {strides = array<i32>} : memref<432x128xbf16, #tpu.memory_space<vmem>>, vector<48x128xbf16>,
    %cst_34 = arith.constant 4.000000e+00 : f32
    %92 = vector.broadcast %cst_34 : f32 to vector<48x128xf32>
    %93 = arith.cmpf oeq, %14, %92 : vector<48x128xf32>
    %cst_35 = arith.constant 5.000000e+00 : f32
    %94 = vector.broadcast %cst_35 : f32 to vector<48x128xf32>
    %95 = arith.cmpf oeq, %14, %94 : vector<48x128xf32>
    %cst_36 = arith.constant 6.000000e+00 : f32
    %96 = vector.broadcast %cst_36 : f32 to vector<48x128xf32>
    %97 = arith.cmpf oeq, %14, %96 : vector<48x128xf32>
    %cst_37 = arith.constant 7.000000e+00 : f32
    %98 = vector.broadcast %cst_37 : f32 to vector<48x128xf32>
    %99 = arith.cmpf oeq, %14, %98 : vector<48x128xf32>
    %100 = arith.select %99, %34, %35 : vector<48x128xi1>, vector<48x128xf32>
    %101 = arith.select %97, %30, %100 : vector<48x128xi1>, vector<48x128xf32>
    %102 = arith.select %95, %25, %101 : vector<48x128xi1>, vector<48x128xf32>
    %103 = arith.select %93, %19, %102 : vector<48x128xi1>, vector<48x128xf32>
    %104 = arith.truncf %103 : vector<48x128xf32> to vector<48x128xbf16>
    %c240 = arith.constant 240 : index
    %c0_38 = arith.constant 0 : index
    %105 = vector.load %arg7[%c240, %c0_38] : memref<432x128xbf16, #tpu.memory_space<vmem>>, vector<48x128xbf16>
    tpu.vector_store %arg7[%c240, %c0_38], %104 {strides = array<i32>} : memref<432x128xbf16, #tpu.memory_space<vmem>>, vector<48x128xbf16>,
    %cst_39 = arith.constant 5.000000e+00 : f32
    %106 = vector.broadcast %cst_39 : f32 to vector<48x128xf32>
    %107 = arith.cmpf oeq, %14, %106 : vector<48x128xf32>
    %cst_40 = arith.constant 6.000000e+00 : f32
    %108 = vector.broadcast %cst_40 : f32 to vector<48x128xf32>
    %109 = arith.cmpf oeq, %14, %108 : vector<48x128xf32>
    %cst_41 = arith.constant 7.000000e+00 : f32
    %110 = vector.broadcast %cst_41 : f32 to vector<48x128xf32>
    %111 = arith.cmpf oeq, %14, %110 : vector<48x128xf32>
    %cst_42 = arith.constant 8.000000e+00 : f32
    %112 = vector.broadcast %cst_42 : f32 to vector<48x128xf32>
    %113 = arith.cmpf oeq, %14, %112 : vector<48x128xf32>
    %114 = arith.select %113, %34, %35 : vector<48x128xi1>, vector<48x128xf32>
    %115 = arith.select %111, %30, %114 : vector<48x128xi1>, vector<48x128xf32>
    %116 = arith.select %109, %25, %115 : vector<48x128xi1>, vector<48x128xf32>
    %117 = arith.select %107, %19, %116 : vector<48x128xi1>, vector<48x128xf32>
    %118 = arith.truncf %117 : vector<48x128xf32> to vector<48x128xbf16>
    %c288 = arith.constant 288 : index
    %c0_43 = arith.constant 0 : index
    %119 = vector.load %arg7[%c288, %c0_43] : memref<432x128xbf16, #tpu.memory_space<vmem>>, vector<48x128xbf16>
    tpu.vector_store %arg7[%c288, %c0_43], %118 {strides = array<i32>} : memref<432x128xbf16, #tpu.memory_space<vmem>>, vector<48x128xbf16>,
    %cst_44 = arith.constant 6.000000e+00 : f32
    %120 = vector.broadcast %cst_44 : f32 to vector<48x128xf32>
    %121 = arith.cmpf oeq, %14, %120 : vector<48x128xf32>
    %cst_45 = arith.constant 7.000000e+00 : f32
    %122 = vector.broadcast %cst_45 : f32 to vector<48x128xf32>
    %123 = arith.cmpf oeq, %14, %122 : vector<48x128xf32>
    %cst_46 = arith.constant 8.000000e+00 : f32
    %124 = vector.broadcast %cst_46 : f32 to vector<48x128xf32>
    %125 = arith.cmpf oeq, %14, %124 : vector<48x128xf32>
    %cst_47 = arith.constant 9.000000e+00 : f32
    %126 = vector.broadcast %cst_47 : f32 to vector<48x128xf32>
    %127 = arith.cmpf oeq, %14, %126 : vector<48x128xf32>
    %128 = arith.select %127, %34, %35 : vector<48x128xi1>, vector<48x128xf32>
    %129 = arith.select %125, %30, %128 : vector<48x128xi1>, vector<48x128xf32>
    %130 = arith.select %123, %25, %129 : vector<48x128xi1>, vector<48x128xf32>
    %131 = arith.select %121, %19, %130 : vector<48x128xi1>, vector<48x128xf32>
    %132 = arith.truncf %131 : vector<48x128xf32> to vector<48x128xbf16>
    %c336 = arith.constant 336 : index
    %c0_48 = arith.constant 0 : index
    %133 = vector.load %arg7[%c336, %c0_48] : memref<432x128xbf16, #tpu.memory_space<vmem>>, vector<48x128xbf16>
    tpu.vector_store %arg7[%c336, %c0_48], %132 {strides = array<i32>} : memref<432x128xbf16, #tpu.memory_space<vmem>>, vector<48x128xbf16>,
    %cst_49 = arith.constant 7.000000e+00 : f32
    %134 = vector.broadcast %cst_49 : f32 to vector<48x128xf32>
    %135 = arith.cmpf oeq, %14, %134 : vector<48x128xf32>
    %cst_50 = arith.constant 8.000000e+00 : f32
    %136 = vector.broadcast %cst_50 : f32 to vector<48x128xf32>
    %137 = arith.cmpf oeq, %14, %136 : vector<48x128xf32>
    %cst_51 = arith.constant 9.000000e+00 : f32
    %138 = vector.broadcast %cst_51 : f32 to vector<48x128xf32>
    %139 = arith.cmpf oeq, %14, %138 : vector<48x128xf32>
    %cst_52 = arith.constant 1.000000e+01 : f32
    %140 = vector.broadcast %cst_52 : f32 to vector<48x128xf32>
    %141 = arith.cmpf oeq, %14, %140 : vector<48x128xf32>
    %142 = arith.select %141, %34, %35 : vector<48x128xi1>, vector<48x128xf32>
    %143 = arith.select %139, %30, %142 : vector<48x128xi1>, vector<48x128xf32>
    %144 = arith.select %137, %25, %143 : vector<48x128xi1>, vector<48x128xf32>
    %145 = arith.select %135, %19, %144 : vector<48x128xi1>, vector<48x128xf32>
    %146 = arith.truncf %145 : vector<48x128xf32> to vector<48x128xbf16>
    %c384 = arith.constant 384 : index
    %c0_53 = arith.constant 0 : index
    %147 = vector.load %arg7[%c384, %c0_53] : memref<432x128xbf16, #tpu.memory_space<vmem>>, vector<48x128xbf16>
    tpu.vector_store %arg7[%c384, %c0_53], %146 {strides = array<i32>} : memref<432x128xbf16, #tpu.memory_space<vmem>>, vector<48x128xbf16>,
    %c0_54 = arith.constant 0 : index
    %c0_55 = arith.constant 0 : index
    %148 = vector.load %arg7[%c0_54, %c0_55] : memref<432x128xbf16, #tpu.memory_space<vmem>>, vector<432x128xbf16>
    %cst_56 = arith.constant dense<0.000000e+00> : vector<32x128xf32>
    %149 = tpu.matmul %1, %148, %cst_56 {dimension_numbers = #tpu.dot_dimension_numbers<[1], [0], [0], [1], [0, 0, 1, 1], [], []>} : vector<32x432xbf16>, vector<432x128xbf16>, vector<32x128xf32> -> vector<32x128xf32>
    %c0_57 = arith.constant 0 : index
    %c0_58 = arith.constant 0 : index
    %150 = vector.load %arg3[%c0_57, %c0_58] : memref<32x1xf32, #tpu.memory_space<vmem>>, vector<32x1xf32>
    %c0_59 = arith.constant 0 : index
    %c0_60 = arith.constant 0 : index
    %151 = vector.load %arg4[%c0_59, %c0_60] : memref<32x1xf32, #tpu.memory_space<vmem>>, vector<32x1xf32>
    %cst_61 = arith.constant dense<0.000000e+00> : vector<128xf32>
    %152 = vector.multi_reduction <add>, %149, %cst_61 [0] : vector<32x128xf32> to vector<128xf32>
    %153 = vector.shape_cast %152 : vector<128xf32> to vector<1x128xf32>
    %cst_62 = arith.constant 3.200000e+01 : f32
    %154 = vector.broadcast %cst_62 : f32 to vector<1x128xf32>
    %155 = arith.divf %153, %154 : vector<1x128xf32>
    %156 = vector.broadcast %155 : vector<1x128xf32> to vector<32x128xf32>
    %157 = arith.subf %149, %156 : vector<32x128xf32>
    %158 = arith.mulf %157, %157 : vector<32x128xf32>
    %cst_63 = arith.constant dense<0.000000e+00> : vector<128xf32>
    %159 = vector.multi_reduction <add>, %158, %cst_63 [0] : vector<32x128xf32> to vector<128xf32>
    %160 = vector.shape_cast %159 : vector<128xf32> to vector<1x128xf32>
    %cst_64 = arith.constant 3.200000e+01 : f32
    %161 = vector.broadcast %cst_64 : f32 to vector<1x128xf32>
    %162 = arith.divf %160, %161 : vector<1x128xf32>
    %163 = vector.broadcast %155 : vector<1x128xf32> to vector<32x128xf32>
    %164 = arith.subf %149, %163 : vector<32x128xf32>
    %cst_65 = arith.constant 9.99999974E-6 : f32
    %165 = vector.broadcast %cst_65 : f32 to vector<1x128xf32>
    %166 = arith.addf %162, %165 : vector<1x128xf32>
    %167 = math.rsqrt %166 : vector<1x128xf32>
    %168 = vector.broadcast %167 : vector<1x128xf32> to vector<32x128xf32>
    %169 = arith.mulf %164, %168 : vector<32x128xf32>
    %170 = vector.broadcast %150 : vector<32x1xf32> to vector<32x128xf32>
    %171 = arith.mulf %169, %170 : vector<32x128xf32>
    %172 = vector.broadcast %151 : vector<32x1xf32> to vector<32x128xf32>
    %173 = arith.addf %171, %172 : vector<32x128xf32>
    %c0_66 = arith.constant 0 : index
    %c0_67 = arith.constant 0 : index
    %174 = vector.load %arg5[%c0_66, %c0_67] : memref<3x288xbf16, #tpu.memory_space<vmem>>, vector<3x288xbf16>
    %175 = arith.negf %173 : vector<32x128xf32>
    %176 = math.exp %175 : vector<32x128xf32>
    %cst_68 = arith.constant 1.000000e+00 : f32
    %177 = vector.broadcast %cst_68 : f32 to vector<32x128xf32>
    %178 = arith.addf %177, %176 : vector<32x128xf32>
    %179 = arith.divf %177, %178 : vector<32x128xf32>
    %180 = arith.mulf %173, %179 : vector<32x128xf32>
    %181 = arith.truncf %180 : vector<32x128xf32> to vector<32x128xbf16>
    %c0_69 = arith.constant 0 : index
    %c0_70 = arith.constant 0 : index
    %182 = vector.load %arg7[%c0_69, %c0_70] : memref<432x128xbf16, #tpu.memory_space<vmem>>, vector<32x128xbf16>
    tpu.vector_store %arg7[%c0_69, %c0_70], %181 {strides = array<i32>} : memref<432x128xbf16, #tpu.memory_space<vmem>>, vector<32x128xbf16>,
    %cst_71 = arith.constant -2.200000e+00 : f32
    %183 = vector.broadcast %cst_71 : f32 to vector<32x128xf32>
    %184 = arith.subf %173, %183 : vector<32x128xf32>
    %cst_72 = arith.constant 2.500000e+00 : f32
    %185 = vector.broadcast %cst_72 : f32 to vector<32x128xf32>
    %186 = arith.mulf %184, %185 : vector<32x128xf32>
    %187 = math.floor %186 : vector<32x128xf32>
    %188 = arith.subf %186, %187 : vector<32x128xf32>
    %189 = arith.mulf %188, %188 : vector<32x128xf32>
    %190 = arith.mulf %189, %188 : vector<32x128xf32>
    %cst_73 = arith.constant 0.166666672 : f32
    %191 = vector.broadcast %cst_73 : f32 to vector<32x128xf32>
    %192 = arith.mulf %190, %191 : vector<32x128xf32>
    %193 = arith.addf %188, %189 : vector<32x128xf32>
    %194 = arith.subf %193, %190 : vector<32x128xf32>
    %cst_74 = arith.constant 5.000000e-01 : f32
    %195 = vector.broadcast %cst_74 : f32 to vector<32x128xf32>
    %196 = arith.mulf %195, %194 : vector<32x128xf32>
    %cst_75 = arith.constant 0.166666672 : f32
    %197 = vector.broadcast %cst_75 : f32 to vector<32x128xf32>
    %198 = arith.addf %197, %196 : vector<32x128xf32>
    %cst_76 = arith.constant 5.000000e-01 : f32
    %199 = vector.broadcast %cst_76 : f32 to vector<32x128xf32>
    %200 = arith.mulf %199, %190 : vector<32x128xf32>
    %201 = arith.subf %200, %189 : vector<32x128xf32>
    %cst_77 = arith.constant 0.666666686 : f32
    %202 = vector.broadcast %cst_77 : f32 to vector<32x128xf32>
    %203 = arith.addf %202, %201 : vector<32x128xf32>
    %cst_78 = arith.constant 1.000000e+00 : f32
    %204 = vector.broadcast %cst_78 : f32 to vector<32x128xf32>
    %205 = arith.subf %204, %192 : vector<32x128xf32>
    %206 = arith.subf %205, %198 : vector<32x128xf32>
    %207 = arith.subf %206, %203 : vector<32x128xf32>
    %cst_79 = arith.constant 0.000000e+00 : f32
    %208 = vector.broadcast %cst_79 : f32 to vector<32x128xf32>
    %cst_80 = arith.constant 0.000000e+00 : f32
    %209 = vector.broadcast %cst_80 : f32 to vector<32x128xf32>
    %210 = arith.cmpf oeq, %187, %209 : vector<32x128xf32>
    %cst_81 = arith.constant 1.000000e+00 : f32
    %211 = vector.broadcast %cst_81 : f32 to vector<32x128xf32>
    %212 = arith.cmpf oeq, %187, %211 : vector<32x128xf32>
    %cst_82 = arith.constant 2.000000e+00 : f32
    %213 = vector.broadcast %cst_82 : f32 to vector<32x128xf32>
    %214 = arith.cmpf oeq, %187, %213 : vector<32x128xf32>
    %cst_83 = arith.constant 3.000000e+00 : f32
    %215 = vector.broadcast %cst_83 : f32 to vector<32x128xf32>
    %216 = arith.cmpf oeq, %187, %215 : vector<32x128xf32>
    %217 = arith.select %216, %207, %208 : vector<32x128xi1>, vector<32x128xf32>
    %218 = arith.select %214, %203, %217 : vector<32x128xi1>, vector<32x128xf32>
    %219 = arith.select %212, %198, %218 : vector<32x128xi1>, vector<32x128xf32>
    %220 = arith.select %210, %192, %219 : vector<32x128xi1>, vector<32x128xf32>
    %221 = arith.truncf %220 : vector<32x128xf32> to vector<32x128xbf16>
    %c32 = arith.constant 32 : index
    %c0_84 = arith.constant 0 : index
    %222 = vector.load %arg7[%c32, %c0_84] : memref<432x128xbf16, #tpu.memory_space<vmem>>, vector<32x128xbf16>
    tpu.vector_store %arg7[%c32, %c0_84], %221 {strides = array<i32>} : memref<432x128xbf16, #tpu.memory_space<vmem>>, vector<32x128xbf16>,
    %cst_85 = arith.constant 1.000000e+00 : f32
    %223 = vector.broadcast %cst_85 : f32 to vector<32x128xf32>
    %224 = arith.cmpf oeq, %187, %223 : vector<32x128xf32>
    %cst_86 = arith.constant 2.000000e+00 : f32
    %225 = vector.broadcast %cst_86 : f32 to vector<32x128xf32>
    %226 = arith.cmpf oeq, %187, %225 : vector<32x128xf32>
    %cst_87 = arith.constant 3.000000e+00 : f32
    %227 = vector.broadcast %cst_87 : f32 to vector<32x128xf32>
    %228 = arith.cmpf oeq, %187, %227 : vector<32x128xf32>
    %cst_88 = arith.constant 4.000000e+00 : f32
    %229 = vector.broadcast %cst_88 : f32 to vector<32x128xf32>
    %230 = arith.cmpf oeq, %187, %229 : vector<32x128xf32>
    %231 = arith.select %230, %207, %208 : vector<32x128xi1>, vector<32x128xf32>
    %232 = arith.select %228, %203, %231 : vector<32x128xi1>, vector<32x128xf32>
    %233 = arith.select %226, %198, %232 : vector<32x128xi1>, vector<32x128xf32>
    %234 = arith.select %224, %192, %233 : vector<32x128xi1>, vector<32x128xf32>
    %235 = arith.truncf %234 : vector<32x128xf32> to vector<32x128xbf16>
    %c64 = arith.constant 64 : index
    %c0_89 = arith.constant 0 : index
    %236 = vector.load %arg7[%c64, %c0_89] : memref<432x128xbf16, #tpu.memory_space<vmem>>, vector<32x128xbf16>
    tpu.vector_store %arg7[%c64, %c0_89], %235 {strides = array<i32>} : memref<432x128xbf16, #tpu.memory_space<vmem>>, vector<32x128xbf16>,
    %cst_90 = arith.constant 2.000000e+00 : f32
    %237 = vector.broadcast %cst_90 : f32 to vector<32x128xf32>
    %238 = arith.cmpf oeq, %187, %237 : vector<32x128xf32>
    %cst_91 = arith.constant 3.000000e+00 : f32
    %239 = vector.broadcast %cst_91 : f32 to vector<32x128xf32>
    %240 = arith.cmpf oeq, %187, %239 : vector<32x128xf32>
    %cst_92 = arith.constant 4.000000e+00 : f32
    %241 = vector.broadcast %cst_92 : f32 to vector<32x128xf32>
    %242 = arith.cmpf oeq, %187, %241 : vector<32x128xf32>
    %cst_93 = arith.constant 5.000000e+00 : f32
    %243 = vector.broadcast %cst_93 : f32 to vector<32x128xf32>
    %244 = arith.cmpf oeq, %187, %243 : vector<32x128xf32>
    %245 = arith.select %244, %207, %208 : vector<32x128xi1>, vector<32x128xf32>
    %246 = arith.select %242, %203, %245 : vector<32x128xi1>, vector<32x128xf32>
    %247 = arith.select %240, %198, %246 : vector<32x128xi1>, vector<32x128xf32>
    %248 = arith.select %238, %192, %247 : vector<32x128xi1>, vector<32x128xf32>
    %249 = arith.truncf %248 : vector<32x128xf32> to vector<32x128xbf16>
    %c96_94 = arith.constant 96 : index
    %c0_95 = arith.constant 0 : index
    %250 = vector.load %arg7[%c96_94, %c0_95] : memref<432x128xbf16, #tpu.memory_space<vmem>>, vector<32x128xbf16>
    tpu.vector_store %arg7[%c96_94, %c0_95], %249 {strides = array<i32>} : memref<432x128xbf16, #tpu.memory_space<vmem>>, vector<32x128xbf16>,
    %cst_96 = arith.constant 3.000000e+00 : f32
    %251 = vector.broadcast %cst_96 : f32 to vector<32x128xf32>
    %252 = arith.cmpf oeq, %187, %251 : vector<32x128xf32>
    %cst_97 = arith.constant 4.000000e+00 : f32
    %253 = vector.broadcast %cst_97 : f32 to vector<32x128xf32>
    %254 = arith.cmpf oeq, %187, %253 : vector<32x128xf32>
    %cst_98 = arith.constant 5.000000e+00 : f32
    %255 = vector.broadcast %cst_98 : f32 to vector<32x128xf32>
    %256 = arith.cmpf oeq, %187, %255 : vector<32x128xf32>
    %cst_99 = arith.constant 6.000000e+00 : f32
    %257 = vector.broadcast %cst_99 : f32 to vector<32x128xf32>
    %258 = arith.cmpf oeq, %187, %257 : vector<32x128xf32>
    %259 = arith.select %258, %207, %208 : vector<32x128xi1>, vector<32x128xf32>
    %260 = arith.select %256, %203, %259 : vector<32x128xi1>, vector<32x128xf32>
    %261 = arith.select %254, %198, %260 : vector<32x128xi1>, vector<32x128xf32>
    %262 = arith.select %252, %192, %261 : vector<32x128xi1>, vector<32x128xf32>
    %263 = arith.truncf %262 : vector<32x128xf32> to vector<32x128xbf16>
    %c128 = arith.constant 128 : index
    %c0_100 = arith.constant 0 : index
    %264 = vector.load %arg7[%c128, %c0_100] : memref<432x128xbf16, #tpu.memory_space<vmem>>, vector<32x128xbf16>
    tpu.vector_store %arg7[%c128, %c0_100], %263 {strides = array<i32>} : memref<432x128xbf16, #tpu.memory_space<vmem>>, vector<32x128xbf16>,
    %cst_101 = arith.constant 4.000000e+00 : f32
    %265 = vector.broadcast %cst_101 : f32 to vector<32x128xf32>
    %266 = arith.cmpf oeq, %187, %265 : vector<32x128xf32>
    %cst_102 = arith.constant 5.000000e+00 : f32
    %267 = vector.broadcast %cst_102 : f32 to vector<32x128xf32>
    %268 = arith.cmpf oeq, %187, %267 : vector<32x128xf32>
    %cst_103 = arith.constant 6.000000e+00 : f32
    %269 = vector.broadcast %cst_103 : f32 to vector<32x128xf32>
    %270 = arith.cmpf oeq, %187, %269 : vector<32x128xf32>
    %cst_104 = arith.constant 7.000000e+00 : f32
    %271 = vector.broadcast %cst_104 : f32 to vector<32x128xf32>
    %272 = arith.cmpf oeq, %187, %271 : vector<32x128xf32>
    %273 = arith.select %272, %207, %208 : vector<32x128xi1>, vector<32x128xf32>
    %274 = arith.select %270, %203, %273 : vector<32x128xi1>, vector<32x128xf32>
    %275 = arith.select %268, %198, %274 : vector<32x128xi1>, vector<32x128xf32>
    %276 = arith.select %266, %192, %275 : vector<32x128xi1>, vector<32x128xf32>
    %277 = arith.truncf %276 : vector<32x128xf32> to vector<32x128xbf16>
    %c160 = arith.constant 160 : index
    %c0_105 = arith.constant 0 : index
    %278 = vector.load %arg7[%c160, %c0_105] : memref<432x128xbf16, #tpu.memory_space<vmem>>, vector<32x128xbf16>
    tpu.vector_store %arg7[%c160, %c0_105], %277 {strides = array<i32>} : memref<432x128xbf16, #tpu.memory_space<vmem>>, vector<32x128xbf16>,
    %cst_106 = arith.constant 5.000000e+00 : f32
    %279 = vector.broadcast %cst_106 : f32 to vector<32x128xf32>
    %280 = arith.cmpf oeq, %187, %279 : vector<32x128xf32>
    %cst_107 = arith.constant 6.000000e+00 : f32
    %281 = vector.broadcast %cst_107 : f32 to vector<32x128xf32>
    %282 = arith.cmpf oeq, %187, %281 : vector<32x128xf32>
    %cst_108 = arith.constant 7.000000e+00 : f32
    %283 = vector.broadcast %cst_108 : f32 to vector<32x128xf32>
    %284 = arith.cmpf oeq, %187, %283 : vector<32x128xf32>
    %cst_109 = arith.constant 8.000000e+00 : f32
    %285 = vector.broadcast %cst_109 : f32 to vector<32x128xf32>
    %286 = arith.cmpf oeq, %187, %285 : vector<32x128xf32>
    %287 = arith.select %286, %207, %208 : vector<32x128xi1>, vector<32x128xf32>
    %288 = arith.select %284, %203, %287 : vector<32x128xi1>, vector<32x128xf32>
    %289 = arith.select %282, %198, %288 : vector<32x128xi1>, vector<32x128xf32>
    %290 = arith.select %280, %192, %289 : vector<32x128xi1>, vector<32x128xf32>
    %291 = arith.truncf %290 : vector<32x128xf32> to vector<32x128xbf16>
    %c192_110 = arith.constant 192 : index
    %c0_111 = arith.constant 0 : index
    %292 = vector.load %arg7[%c192_110, %c0_111] : memref<432x128xbf16, #tpu.memory_space<vmem>>, vector<32x128xbf16>
    tpu.vector_store %arg7[%c192_110, %c0_111], %291 {strides = array<i32>} : memref<432x128xbf16, #tpu.memory_space<vmem>>, vector<32x128xbf16>,
    %cst_112 = arith.constant 6.000000e+00 : f32
    %293 = vector.broadcast %cst_112 : f32 to vector<32x128xf32>
    %294 = arith.cmpf oeq, %187, %293 : vector<32x128xf32>
    %cst_113 = arith.constant 7.000000e+00 : f32
    %295 = vector.broadcast %cst_113 : f32 to vector<32x128xf32>
    %296 = arith.cmpf oeq, %187, %295 : vector<32x128xf32>
    %cst_114 = arith.constant 8.000000e+00 : f32
    %297 = vector.broadcast %cst_114 : f32 to vector<32x128xf32>
    %298 = arith.cmpf oeq, %187, %297 : vector<32x128xf32>
    %cst_115 = arith.constant 9.000000e+00 : f32
    %299 = vector.broadcast %cst_115 : f32 to vector<32x128xf32>
    %300 = arith.cmpf oeq, %187, %299 : vector<32x128xf32>
    %301 = arith.select %300, %207, %208 : vector<32x128xi1>, vector<32x128xf32>
    %302 = arith.select %298, %203, %301 : vector<32x128xi1>, vector<32x128xf32>
    %303 = arith.select %296, %198, %302 : vector<32x128xi1>, vector<32x128xf32>
    %304 = arith.select %294, %192, %303 : vector<32x128xi1>, vector<32x128xf32>
    %305 = arith.truncf %304 : vector<32x128xf32> to vector<32x128xbf16>
    %c224 = arith.constant 224 : index
    %c0_116 = arith.constant 0 : index
    %306 = vector.load %arg7[%c224, %c0_116] : memref<432x128xbf16, #tpu.memory_space<vmem>>, vector<32x128xbf16>
    tpu.vector_store %arg7[%c224, %c0_116], %305 {strides = array<i32>} : memref<432x128xbf16, #tpu.memory_space<vmem>>, vector<32x128xbf16>,
    %cst_117 = arith.constant 7.000000e+00 : f32
    %307 = vector.broadcast %cst_117 : f32 to vector<32x128xf32>
    %308 = arith.cmpf oeq, %187, %307 : vector<32x128xf32>
    %cst_118 = arith.constant 8.000000e+00 : f32
    %309 = vector.broadcast %cst_118 : f32 to vector<32x128xf32>
    %310 = arith.cmpf oeq, %187, %309 : vector<32x128xf32>
    %cst_119 = arith.constant 9.000000e+00 : f32
    %311 = vector.broadcast %cst_119 : f32 to vector<32x128xf32>
    %312 = arith.cmpf oeq, %187, %311 : vector<32x128xf32>
    %cst_120 = arith.constant 1.000000e+01 : f32
    %313 = vector.broadcast %cst_120 : f32 to vector<32x128xf32>
    %314 = arith.cmpf oeq, %187, %313 : vector<32x128xf32>
    %315 = arith.select %314, %207, %208 : vector<32x128xi1>, vector<32x128xf32>
    %316 = arith.select %312, %203, %315 : vector<32x128xi1>, vector<32x128xf32>
    %317 = arith.select %310, %198, %316 : vector<32x128xi1>, vector<32x128xf32>
    %318 = arith.select %308, %192, %317 : vector<32x128xi1>, vector<32x128xf32>
    %319 = arith.truncf %318 : vector<32x128xf32> to vector<32x128xbf16>
    %c256 = arith.constant 256 : index
    %c0_121 = arith.constant 0 : index
    %320 = vector.load %arg7[%c256, %c0_121] : memref<432x128xbf16, #tpu.memory_space<vmem>>, vector<32x128xbf16>
    tpu.vector_store %arg7[%c256, %c0_121], %319 {strides = array<i32>} : memref<432x128xbf16, #tpu.memory_space<vmem>>, vector<32x128xbf16>,
    %c0_122 = arith.constant 0 : index
    %c0_123 = arith.constant 0 : index
    %321 = vector.load %arg7[%c0_122, %c0_123] : memref<432x128xbf16, #tpu.memory_space<vmem>>, vector<288x128xbf16>
    %cst_124 = arith.constant dense<0.000000e+00> : vector<3x128xf32>
    %322 = tpu.matmul %174, %321, %cst_124 {dimension_numbers = #tpu.dot_dimension_numbers<[1], [0], [0], [1], [0, 0, 1, 1], [], []>} : vector<3x288xbf16>, vector<288x128xbf16>, vector<3x128xf32> -> vector<3x128xf32>
    %c0_125 = arith.constant 0 : index
    %c0_126 = arith.constant 0 : index
    %323 = vector.load %arg6[%c0_125, %c0_126] : memref<3x128xf32, #tpu.memory_space<vmem>>, vector<3x128xf32>
    tpu.vector_store %arg6[%c0_125, %c0_126], %322 {strides = array<i32>} : memref<3x128xf32, #tpu.memory_space<vmem>>, vector<3x128xf32>,
    return
  }
  func.func @transform_0(%arg0: i32) -> (i32, i32) {
    %c0_i32 = arith.constant 0 : i32
    %c0_i32_0 = arith.constant 0 : i32
    return %c0_i32, %arg0 : i32, i32
  }
  func.func @transform_1(%arg0: i32) -> (i32, i32) {
    %c0_i32 = arith.constant 0 : i32
    %c0_i32_0 = arith.constant 0 : i32
    %c0_i32_1 = arith.constant 0 : i32
    return %c0_i32, %c0_i32_0 : i32, i32
  }
  func.func @transform_2(%arg0: i32) -> (i32, i32) {
    %c0_i32 = arith.constant 0 : i32
    %c0_i32_0 = arith.constant 0 : i32
    %c0_i32_1 = arith.constant 0 : i32
    return %c0_i32, %c0_i32_0 : i32, i32
  }
  func.func @transform_3(%arg0: i32) -> (i32, i32) {
    %c0_i32 = arith.constant 0 : i32
    %c0_i32_0 = arith.constant 0 : i32
    %c0_i32_1 = arith.constant 0 : i32
    return %c0_i32, %c0_i32_0 : i32, i32
  }
  func.func @transform_4(%arg0: i32) -> (i32, i32) {
    %c0_i32 = arith.constant 0 : i32
    %c0_i32_0 = arith.constant 0 : i32
    %c0_i32_1 = arith.constant 0 : i32
    return %c0_i32, %c0_i32_0 : i32, i32
  }
  func.func @transform_5(%arg0: i32) -> (i32, i32) {
    %c0_i32 = arith.constant 0 : i32
    %c0_i32_0 = arith.constant 0 : i32
    return %c0_i32, %arg0 : i32, i32
  }
}

</mosaic_0001>

<bundles_post_ra>
// kernel: bb_kan_forward.1
= control target key start
LH: loop header
LB: loop body
LE: loop exit
PB: predicated region body
PF: predicated region fallthrough
CT: control target
= control target key end

     0   :  { %v2555_v0 = vmov 0   ;;  %s3990_s0 = inlined_call_operand.vmem [shape: f32[48,128], index: 0, kind: input, shape index: {}]   ;;  %s3991_s1 = inlined_call_operand.vmem [shape: bf16[32,432], index: 1, kind: input, shape index: {}]   ;;  %s3992_s3 = inlined_call_operand.vmem [shape: f32[32,1], index: 3, kind: input, shape index: {}]   ;;  %s3993_s2 = inlined_call_operand.vmem [shape: f32[32,1], index: 2, kind: input, shape index: {}]   ;;  %s3994_s4 = inlined_call_operand.vmem [shape: bf16[3,288], index: 4, kind: input, shape index: {}]   ;;  %s3995_s5 = inlined_call_operand.vmem [shape: f32[3,128], index: 5, kind: output, shape index: {}]  }
   0x1   :  { %1017 = vmatprep.subr.bf16.mxu1 %v2555_v0  ;;  %v25_v1 = vld [vmem:[%s3990_s0 + $0x20] sm:$0xff]  ;;  %v26_v2 = vld [vmem:[%s3990_s0 + $0x28] sm:$0xff]  ;;  %2448 = vset.pattern.permute.xlu1 %v2555_v0  ;;  %v23_v11 = vld [vmem:[%s3990_s0 + $0x10] sm:$0xff] }
   0x2   :  { %v2599_v3 = vld [vmem:[%s3990_s0] sm:$0xff]  ;;  %v1874_v4 = vadd.f32 2.2, %v25_v1  ;;  %v1875_v5 = vadd.f32 2.2, %v26_v2  ;;  %v2605_v6 = vld [vmem:[%s3990_s0 + $0x8] sm:$0xff]  ;;  %2447 = vset.pattern.permute.xlu0 %v2555_v0 }
   0x3   :  { %v1870_v7 = vadd.f32 2.2, %v2599_v3  ;;  %v1871_v8 = vadd.f32 2.2, %v2605_v6  ;;  %v2616_v12 = vld [vmem:[%s3990_s0 + $0x18] sm:$0xff] }
   0x4   :  { %v117_v9 = vmul.f32 2.5, %v1874_v4  ;;  %v118_v10 = vmul.f32 2.5, %v1875_v5  ;;  %v1872_v19 = vadd.f32 2.2, %v23_v11  ;;  %v1873_v20 = vadd.f32 2.2, %v2616_v12 }
   0x5   :  { %v113_v13 = vmul.f32 2.5, %v1870_v7  ;;  %v114_v14 = vmul.f32 2.5, %v1871_v8  ;;  %v1862_v23 = vmul.f32 -1.442695, %v25_v1  ;;  %v2629_v26 = vmul.f32 -1.442695, %v26_v2 }
   0x6   :  { %v2618_v15 = vfloor.f32 %v117_v9  ;;  %v2620_v16 = vfloor.f32 %v118_v10  ;;  %v2633_v29 = vmul.f32 2.5, %v1872_v19  ;;  %v2635_v30 = vmul.f32 2.5, %v1873_v20  ;;  %v2475_v35 = vld [vmem:[%s3991_s1 + $0x4] ss:$16 sps:$4 sm:$0xff]  }
   0x7   :  { %v2622_v17 = vfloor.f32 %v113_v13  ;;  %v2624_v18 = vfloor.f32 %v114_v14  ;;  %2507 = vpow2.f32 %v1862_v23  ;;  %v2640_v38 = vmul.f32 -1.442695, %v23_v11  ;;  %1000 = vmatprep.mubr.bf16.mxu0 %v2475_v35 }
   0x8   :  { %v129_v21 = vsub.f32 %v117_v9, %v2618_v15  ;;  %v130_v22 = vsub.f32 %v118_v10, %v2620_v16  ;;  %vm4003_vm0 = vcmp.eq.f32.partialorder %v2618_v15, 7.0  ;;  %vm4011_vm1 = vcmp.eq.f32.partialorder %v2620_v16, 7.0 }
   0x9   :  { %v125_v27 = vsub.f32 %v113_v13, %v2622_v17  ;;  %v126_v28 = vsub.f32 %v114_v14, %v2624_v18  ;;  %vm4010_vm2 = vcmp.eq.f32.partialorder %v2618_v15, 6.0  ;;  %vm4004_vm3 = vcmp.eq.f32.partialorder %v2620_v16, 6.0 }
   0xa   :  { %v135_v24 = vmul.f32 %v129_v21, %v129_v21  ;;  %v136_v25 = vmul.f32 %v130_v22, %v130_v22  ;;  %vm3999_vm4 = vcmp.eq.f32.partialorder %v2618_v15, 9.0  ;;  %vm3998_vm5 = vcmp.eq.f32.partialorder %v2620_v16, 9.0 }
   0xb   :  { %v131_v36 = vmul.f32 %v125_v27, %v125_v27  ;;  %v132_v37 = vmul.f32 %v126_v28, %v126_v28  ;;  %vm3997_vm6 = vcmp.eq.f32.partialorder %v2618_v15, 8.0  ;;  %vm3996_vm7 = vcmp.eq.f32.partialorder %v2620_v16, 8.0 }
   0xc   :  { %v141_v31 = vmul.f32 %v135_v24, %v129_v21  ;;  %v142_v32 = vmul.f32 %v136_v25, %v130_v22  ;;  %v153_v33 = vadd.f32 %v135_v24, %v129_v21  ;;  %v154_v34 = vadd.f32 %v136_v25, %v130_v22 }
   0xd   :  { %v137_v45 = vmul.f32 %v131_v36, %v125_v27  ;;  %v138_v46 = vmul.f32 %v132_v37, %v126_v28  ;;  %v149_v57 = vadd.f32 %v131_v36, %v125_v27  ;;  %v150_v58 = vadd.f32 %v132_v37, %v126_v28 }
   0xe   :  { %v2642_v39 = vmul.f32 0.16666667, %v141_v31  ;;  %v2644_v40 = vmul.f32 0.16666667, %v142_v32  ;;  %v159_v41 = vsub.f32 %v153_v33, %v141_v31  ;;  %v160_v42 = vsub.f32 %v154_v34, %v142_v32 }
   0xf   :  { %v177_v43 = vmul.f32 0.5, %v141_v31  ;;  %v178_v44 = vmul.f32 0.5, %v142_v32  ;;  %v2652_v53 = vmul.f32 0.16666667, %v137_v45  ;;  %v2654_v54 = vmul.f32 0.16666667, %v138_v46 }
  0x10   :  { %v165_v47 = vmul.f32 0.5, %v159_v41  ;;  %v166_v48 = vmul.f32 0.5, %v160_v42  ;;  %v195_v49 = vsub.f32 1.0, %v2642_v39  ;;  %v196_v50 = vsub.f32 1.0, %v2644_v40  ;;  %v1072_v31 = vld [vmem:[%s3992_s3 + $0x10] sm:$0xff] }
  0x11   :  { %v183_v51 = vsub.f32 %v177_v43, %v135_v24  ;;  %v184_v52 = vsub.f32 %v178_v44, %v136_v25  ;;  %v173_v61 = vmul.f32 0.5, %v137_v45  ;;  %v174_v62 = vmul.f32 0.5, %v138_v46  ;;  %v1068_v32 = vld [vmem:[%s3993_s2 + $0x10] sm:$0xff]  ;;  %1145 = vperm.xlu1 %2448, %v1072_v31   ;;  %v1073_v44 = vld [vmem:[%s3992_s3 + $0x18] sm:$0xff] }
  0x12   :  { %v2656_v55 = vadd.f32 0.16666667, %v165_v47  ;;  %v2658_v56 = vadd.f32 0.16666667, %v166_v48  ;;  %v155_v2 = vsub.f32 %v149_v57, %v137_v45  ;;  %v156_v4 = vsub.f32 %v150_v58, %v138_v46  ;;  %1121 = vperm.xlu0 %2447, %v1068_v32   ;;  %v1069_v48 = vld [vmem:[%s3993_s2 + $0x18] sm:$0xff] }
  0x13   :  { %v2660_v59 = vadd.f32 0.6666667, %v183_v51  ;;  %v2662_v60 = vadd.f32 0.6666667, %v184_v52  ;;  %v179_v5 = vsub.f32 %v173_v61, %v131_v36  ;;  %v180_v7 = vsub.f32 %v174_v62, %v132_v37  ;;  %v1067_v62 = vld [vmem:[%s3993_s2 + $0x8] sm:$0xff] }
  0x14   :  { %v201_v63 = vsub.f32 %v195_v49, %v2656_v55  ;;  %v202_v1 = vsub.f32 %v196_v50, %v2658_v56  ;;  %v161_v10 = vmul.f32 0.5, %v155_v2  ;;  %v162_v11 = vmul.f32 0.5, %v156_v4  ;;  %v2694_v25 = vpop.eup %2507 }
  0x15   :  { %v191_v13 = vsub.f32 1.0, %v2652_v53  ;;  %v192_v14 = vsub.f32 1.0, %v2654_v54  ;;  %v2678_v19 = vadd.f32 0.6666667, %v179_v5  ;;  %v2680_v20 = vadd.f32 0.6666667, %v180_v7  ;;  %1150 = vperm.xlu1 %2448, %v1073_v44  }
  0x16   :  { %v2669_v8 = vsub.f32 %v201_v63, %v2660_v59  ;;  %v2672_v9 = vsub.f32 %v202_v1, %v2662_v60  ;;  %vm4000_vm8 = vcmp.eq.f32.partialorder %v2622_v17, 4.0  ;;  %vm4009_vm9 = vcmp.eq.f32.partialorder %v2624_v18, 4.0  ;;  %1126 = vperm.xlu0 %2447, %v1069_v48   ;;  %v1066_v5 = vld [vmem:[%s3993_s2] sm:$0xff] }
  0x17   :  { %v2690_v23 = vadd.f32 0.16666667, %v161_v10  ;;  %v2692_v24 = vadd.f32 0.16666667, %v162_v11  ;;  %vm4002_vm10 = vcmp.eq.f32.partialorder %v2622_v17, 5.0  ;;  %vm4008_vm11 = vcmp.eq.f32.partialorder %v2622_v17, 7.0 }
  0x18   :  { %v597_v21 = vsel %vm3999_vm4, %v2669_v8, 0.0  ;;  %v598_v22 = vsel %vm3998_vm5, %v2672_v9, 0.0  ;;  %v2725_v42 = vfloor.f32 %v2633_v29  ;;  %v2728_v43 = vfloor.f32 %v2635_v30 }
  0x19   :  { %v603_v27 = vsel %vm3997_vm6, %v2660_v59, %v597_v21  ;;  %v604_v28 = vsel %vm3996_vm7, %v2662_v60, %v598_v22  ;;  %v197_v35 = vsub.f32 %v191_v13, %v2690_v23  ;;  %v198_v36 = vsub.f32 %v192_v14, %v2692_v24  ;;  %1116 = vperm.xlu1 %2448, %v1067_v62  }
  0x1a   :  { %v609_v33 = vsel %vm4003_vm0, %v2656_v55, %v603_v27  ;;  %v610_v34 = vsel %vm4011_vm1, %v2658_v56, %v604_v28  ;;  %vm4007_vm12 = vcmp.eq.f32.partialorder %v2624_v18, 7.0  ;;  %vm4006_vm13 = vcmp.eq.f32.partialorder %v2622_v17, 6.0  ;;  %1111 = vperm.xlu0 %2447, %v1066_v5  }
  0x1b   :  { %v615_v37 = vsel %vm4010_vm2, %v2642_v39, %v609_v33  ;;  %v616_v41 = vsel %vm4004_vm3, %v2644_v40, %v610_v34  ;;  %v2734_v46 = vsub.f32 %v197_v35, %v2678_v19  ;;  %v2737_v47 = vsub.f32 %v198_v36, %v2680_v20  ;;  %v1071_v34 = vld [vmem:[%s3992_s3 + $0x8] sm:$0xff]  ;;  %v1070_v35 = vld [vmem:[%s3992_s3] sm:$0xff] }
  0x1c   :  { %v2232_v45 = vpack.c.bf16 %v616_v41, %v615_v37  ;;  %vm4005_vm14 = vcmp.eq.f32.partialorder %v2624_v18, 6.0  ;;  %v127_v49 = vsub.f32 %v2633_v29, %v2725_v42  ;;  %v128_v50 = vsub.f32 %v2635_v30, %v2728_v43 }
  0x1d   :  { %v2752_v51 = vsel %vm4010_vm2, %v2669_v8, 0.0  ;;  %v2757_v52 = vsel %vm4004_vm3, %v2672_v9, 0.0  ;;  %v537_v57 = vsel %vm3997_vm6, %v2669_v8, 0.0  ;;  %vm4001_vm15 = vcmp.eq.f32.partialorder %v2624_v18, 5.0  ;;  %1140 = vperm.xlu1 %2448, %v1071_v34  }
  0x1e   :  { %2361 = vst [vmem:[#allocation2 + $0xb8] sm:$0xff] %v2232_v45   ;;  %v2766_v29 = vsel %vm3996_vm7, %v2672_v9, 0.0  ;;  %v2771_v30 = vsel %vm4000_vm8, %v2734_v46, 0.0  ;;  %v473_v58 = vsel %vm4008_vm11, %v2734_v46, 0.0  ;;  %v474_v61 = vsel %vm4007_vm12, %v2737_v47, 0.0  ;;  %1135 = vperm.xlu0 %2447, %v1070_v35  }
  0x1f   :  { %v479_v63 = vsel %vm4006_vm13, %v2678_v19, %v473_v58  ;;  %v480_v1 = vsel %vm4005_vm14, %v2680_v20, %v474_v61  ;;  %v133_v2 = vmul.f32 %v127_v49, %v127_v49  ;;  %v134_v4 = vmul.f32 %v128_v50, %v128_v50 }
  0x20   :  { %v2794_v7 = vsel %vm4009_vm9, %v2737_v47, 0.0  ;;  %v353_v10 = vsel %vm4002_vm10, %v2734_v46, 0.0  ;;  %v485_v11 = vsel %vm4002_vm10, %v2690_v23, %v479_v63  ;;  %v486_v13 = vsel %vm4001_vm15, %v2692_v24, %v480_v1 }
  0x21   :  { %v491_v14 = vsel %vm4000_vm8, %v2652_v53, %v485_v11  ;;  %v492_v21 = vsel %vm4009_vm9, %v2654_v54, %v486_v13  ;;  %v139_v22 = vmul.f32 %v133_v2, %v127_v49  ;;  %v140_v27 = vmul.f32 %v134_v4, %v128_v50 }
  0x22   :  { %v354_v28 = vsel %vm4001_vm15, %v2737_v47, 0.0  ;;  %v2192_v31 = vpack.c.bf16 %v492_v21, %v491_v14  ;;  %v151_v32 = vadd.f32 %v133_v2, %v127_v49  ;;  %v152_v33 = vadd.f32 %v134_v4, %v128_v50 }
  0x23   :  { %v2820_v36 = vmul.f32 0.16666667, %v139_v22  ;;  %v2822_v37 = vmul.f32 0.16666667, %v140_v27  ;;  %v175_v41 = vmul.f32 0.5, %v139_v22  ;;  %v176_v44 = vmul.f32 0.5, %v140_v27 }
  0x24   :  { %v2827_v48 = vsel %vm4000_vm8, %v2678_v19, %v353_v10  ;;  %2353 = vst [vmem:[#allocation2 + $0x78] sm:$0xff] %v2192_v31   ;;  %v157_v49 = vsub.f32 %v151_v32, %v139_v22  ;;  %v158_v50 = vsub.f32 %v152_v33, %v140_v27  ;;  %vm4015_vm7 = vcmp.eq.f32.partialorder %v2725_v42, 3.0 }
  0x25   :  { %v2449_v45 = vld [vmem:[#allocation2 + $0xb8] sm:$0xff]   ;;  %v181_v58 = vsub.f32 %v175_v41, %v133_v2  ;;  %v182_v61 = vsub.f32 %v176_v44, %v134_v4  ;;  %vm4016_vm4 = vcmp.eq.f32.partialorder %v2728_v43, 3.0  ;;  %v543_v62 = vsel %vm4003_vm0, %v2660_v59, %v537_v57 }
  0x26   :  { %1018 = vmatpush1.bf16.msra.mxu1 %v2449_v45  ;;  %v163_v63 = vmul.f32 0.5, %v157_v49  ;;  %v164_v1 = vmul.f32 0.5, %v158_v50  ;;  %v193_v5 = vsub.f32 1.0, %v2820_v36  ;;  %v194_v10 = vsub.f32 1.0, %v2822_v37 }
  0x27   :  { %v2840_v2 = vadd.f32 0.6666667, %v181_v58  ;;  %v2842_v4 = vadd.f32 0.6666667, %v182_v61  ;;  %vm4028_vm10 = vcmp.eq.f32.partialorder %v2725_v42, 4.0  ;;  %vm4014_vm0 = vcmp.eq.f32.partialorder %v2728_v43, 4.0  ;;  %1019 = vmatprep.subr.bf16.mxu1 %v2555_v0 }
  0x28   :  { %v2847_v57 = vadd.f32 0.16666667, %v163_v63  ;;  %v2849_v11 = vadd.f32 0.16666667, %v164_v1  ;;  %vm469_vm3 = vcmp.eq.f32.partialorder %v2725_v42, 7.0  ;;  %vm409_vm12 = vcmp.eq.f32.partialorder %v2725_v42, 6.0 }
  0x29   :  { %vm529_vm15 = vcmp.eq.f32.partialorder %v2725_v42, 8.0  ;;  %vm530_vm8 = vcmp.eq.f32.partialorder %v2728_v43, 8.0  ;;  %vm4018_vm5 = vcmp.eq.f32.partialorder %v2725_v42, 9.0  ;;  %vm4017_vm6 = vcmp.eq.f32.partialorder %v2728_v43, 9.0 }
  0x2a   :  { %v199_v13 = vsub.f32 %v193_v5, %v2847_v57  ;;  %v200_v14 = vsub.f32 %v194_v10, %v2849_v11  ;;  %vm291_vm13 = vcmp.eq.f32.partialorder %v2618_v15, 4.0  ;;  %v2867_v21 = vsel %vm4009_vm9, %v2680_v20, %v354_v28 }
  0x2b   :  { %v2450_v22 = vld [vmem:[#allocation2 + $0x78] sm:$0xff]   ;;  %vm4019_vm11 = vcmp.eq.f32.partialorder %v2620_v16, 4.0  ;;  %v2874_v27 = vsel %vm4011_vm1, %v2662_v60, %v2766_v29  ;;  %v2879_v31 = vsel %vm4010_vm2, %v2656_v55, %v543_v62  ;;  %vm4013_vm9 = vcmp.eq.f32.partialorder %v2618_v15, 5.0 }
  0x2c   :  { %v2882_v32 = vsub.f32 %v199_v13, %v2840_v2  ;;  %v2885_v28 = vsub.f32 %v200_v14, %v2842_v4  ;;  %vm4012_vm14 = vcmp.eq.f32.partialorder %v2620_v16, 5.0  ;;  %2382 = vmatprep.subr.bf16.mxu0 %v2450_v22  ;;  %v423_v29 = vsel %vm4013_vm9, %v2660_v59, %v2752_v51 }
  0x2d   :  { %v424_v33 = vsel %vm4012_vm14, %v2662_v60, %v2757_v52  ;;  %vm4020_vm2 = vcmp.eq.f32.partialorder %v2622_v17, 1.0  ;;  %2509 = vpow2.f32 %v2629_v26  ;;  %vm4023_vm1 = vcmp.eq.f32.partialorder %v2624_v18, 1.0 }
  0x2e   :  { %v235_v34 = vsel %vm4015_vm7, %v2882_v32, 0.0  ;;  %v236_v35 = vsel %vm4016_vm4, %v2885_v28, 0.0  ;;  %v295_v51 = vsel %vm4028_vm10, %v2882_v32, 0.0  ;;  %v296_v52 = vsel %vm4014_vm0, %v2885_v28, 0.0 }
  0x2f   :  { %vm4050_vm14 = vcmp.eq.f32.partialorder %v2725_v42, 2.0  ;;  %vm4051_vm9 = vcmp.eq.f32.partialorder %v2728_v43, 2.0  ;;  %v301_v44 = vsel %vm4015_vm7, %v2840_v2, %v295_v51  ;;  %v302_v45 = vsel %vm4016_vm4, %v2842_v4, %v296_v52 }
  0x30   :  { %v241_v26 = vsel %vm4050_vm14, %v2840_v2, %v235_v34  ;;  %v242_v41 = vsel %vm4051_vm9, %v2842_v4, %v236_v35  ;;  %vm4052_vm0 = vcmp.eq.f32.partialorder %v2725_v42, 1.0  ;;  %vm4053_vm14 = vcmp.eq.f32.partialorder %v2728_v43, 1.0 }
  0x31   :  { %v2927_v49 = vsel %vm4052_vm0, %v2847_v57, %v241_v26  ;;  %v2932_v50 = vsel %vm4053_vm14, %v2849_v11, %v242_v41  ;;  %vm4054_vm9 = vcmp.eq.f32.partialorder %v2725_v42, 2.0  ;;  %vm4055_vm7 = vcmp.eq.f32.partialorder %v2728_v43, 2.0  ;;  %vm4056_vm4 = vmmov %vm4052_vm0 }
  0x32   :  { %v307_v58 = vsel %vm4054_vm9, %v2847_v57, %v301_v44  ;;  %v308_v61 = vsel %vm4055_vm7, %v2849_v11, %v302_v45  ;;  %vm4057_vm0 = vmmov %vm4053_vm14  ;;  %v595_v1 = vsel %vm4018_vm5, %v2882_v32, 0.0  ;;  %v596_v5 = vsel %vm4017_vm6, %v2885_v28, 0.0 }
  0x33   :  { %v313_v62 = vsel %vm4056_vm4, %v2820_v36, %v307_v58  ;;  %v314_v63 = vsel %vm4057_vm0, %v2822_v37, %v308_v61  ;;  %v601_v13 = vsel %vm529_vm15, %v2840_v2, %v595_v1  ;;  %v602_v14 = vsel %vm530_vm8, %v2842_v4, %v596_v5 }
  0x34   :  { %v2152_v10 = vpack.c.bf16 %v314_v63, %v313_v62  ;;  %v429_v22 = vsel %vm291_vm13, %v2656_v55, %v423_v29  ;;  %v607_v34 = vsel %vm469_vm3, %v2847_v57, %v601_v13  ;;  %vm4058_vm4 = vcmp.eq.f32.partialorder %v2728_v43, 7.0 }
  0x35   :  { %v608_v35 = vsel %vm4058_vm4, %v2849_v11, %v602_v14  ;;  %v430_v51 = vsel %vm4019_vm11, %v2658_v56, %v424_v33  ;;  %vm4059_vm7 = vcmp.eq.f32.partialorder %v2618_v15, 3.0  ;;  %v613_v29 = vsel %vm409_vm12, %v2820_v36, %v607_v34 }
  0x36   :  { %v435_v52 = vsel %vm4059_vm7, %v2642_v39, %v429_v22  ;;  %2345 = vst [vmem:[#allocation2 + $0x38] sm:$0xff] %v2152_v10   ;;  %vm4060_vm14 = vcmp.eq.f32.partialorder %v2728_v43, 6.0  ;;  %vm4061_vm9 = vcmp.eq.f32.partialorder %v2620_v16, 3.0  ;;  %vm4027_vm0 = vcmp.eq.f32.partialorder %v2622_v17, 2.0 }
  0x37   :  { %v614_v26 = vsel %vm4060_vm14, %v2822_v37, %v608_v35  ;;  %v436_v41 = vsel %vm4061_vm9, %v2644_v40, %v430_v51  ;;  %vm4026_vm4 = vcmp.eq.f32.partialorder %v2624_v18, 2.0  ;;  %vm227_vm7 = vcmp.eq.f32.partialorder %v2622_v17, 3.0 }
  0x38   :  { %v2227_v33 = vpack.c.bf16 %v614_v26, %v613_v29  ;;  %v2187_v44 = vpack.c.bf16 %v436_v41, %v435_v52  ;;  %vm228_vm6 = vcmp.eq.f32.partialorder %v2624_v18, 3.0  ;;  %v299_v45 = vsel %vm227_vm7, %v2678_v19, %v2771_v30 }
  0x39   :  { %vm4024_vm14 = vcmp.eq.f32.partialorder %v2622_v17, 8.0  ;;  %vm4025_vm5 = vcmp.eq.f32.partialorder %v2624_v18, 8.0  ;;  %v300_v58 = vsel %vm228_vm6, %v2680_v20, %v2794_v7  ;;  %v305_v61 = vsel %vm4027_vm0, %v2690_v23, %v299_v45 }
  0x3a   :  { %2360 = vst [vmem:[#allocation2 + $0xb0] sm:$0xff] %v2227_v33   ;;  %2352 = vst [vmem:[#allocation2 + $0x70] sm:$0xff] %v2187_v44   ;;  %vm4022_vm9 = vcmp.eq.f32.partialorder %v2622_v17, 9.0  ;;  %vm4021_vm11 = vcmp.eq.f32.partialorder %v2624_v18, 9.0  ;;  %v306_v30 = vsel %vm4026_vm4, %v2692_v24, %v300_v58  ;;  %v311_v62 = vsel %vm4020_vm2, %v2652_v53, %v305_v61  ;;  %v3023_v13 = vpop.eup %2509 }
  0x3b   :  { %v593_v7 = vsel %vm4022_vm9, %v2734_v46, 0.0  ;;  %v594_v63 = vsel %vm4021_vm11, %v2737_v47, 0.0  ;;  %v312_v1 = vsel %vm4023_vm1, %v2654_v54, %v306_v30  ;;  %vm4030_vm2 = vcmp.eq.f32.partialorder %v2725_v42, 5.0 }
  0x3c   :  { %v599_v5 = vsel %vm4024_vm14, %v2678_v19, %v593_v7  ;;  %v600_v10 = vsel %vm4025_vm5, %v2680_v20, %v594_v63  ;;  %v2147_v14 = vpack.c.bf16 %v312_v1, %v311_v62  ;;  %vm4062_vm11 = vcmp.eq.f32.partialorder %v2622_v17, 7.0 }
  0x3d   :  { %v605_v22 = vsel %vm4062_vm11, %v2690_v23, %v599_v5  ;;  %vm4063_vm9 = vcmp.eq.f32.partialorder %v2624_v18, 7.0  ;;  %vm4029_vm1 = vcmp.eq.f32.partialorder %v2728_v43, 5.0  ;;  %v2451_v35 = vld [vmem:[#allocation2 + $0x38] sm:$0xff]   ;;  %vm4064_vm14 = vcmp.eq.f32.partialorder %v2622_v17, 6.0 }
  0x3e   :  { %v606_v34 = vsel %vm4063_vm9, %v2692_v24, %v600_v10  ;;  %v611_v51 = vsel %vm4064_vm14, %v2652_v53, %v605_v22  ;;  %vm4065_vm5 = vcmp.eq.f32.partialorder %v2624_v18, 6.0  ;;  %v415_v29 = vsel %vm409_vm12, %v2882_v32, 0.0  ;;  %2344 = vst [vmem:[#allocation2 + $0x30] sm:$0xff] %v2147_v14   ;;  %2383 = vmatpush3.bf16.msra.mxu0 %v2451_v35 }
  0x3f   :  { %v612_v52 = vsel %vm4065_vm5, %v2654_v54, %v606_v34  ;;  %vm4066_vm11 = vcmp.eq.f32.partialorder %v2620_v16, 6.0  ;;  %vm4067_vm9 = vcmp.eq.f32.partialorder %v2728_v43, 6.0  ;;  %v421_v44 = vsel %vm4030_vm2, %v2840_v2, %v415_v29 }
  0x40   :  { %v550_v26 = vsel %vm4066_vm11, %v2658_v56, %v2874_v27  ;;  %v2222_v41 = vpack.c.bf16 %v612_v52, %v611_v51  ;;  %v416_v33 = vsel %vm4067_vm9, %v2885_v28, 0.0  ;;  %vm213_vm5 = vcmp.eq.f32.partialorder %v2618_v15, 0.0 }
  0x41   :  { %v422_v45 = vsel %vm4029_vm1, %v2842_v4, %v416_v33  ;;  %v427_v27 = vsel %vm4028_vm10, %v2847_v57, %v421_v44  ;;  %vm214_vm14 = vcmp.eq.f32.partialorder %v2620_v16, 0.0  ;;  %vm219_vm11 = vcmp.eq.f32.partialorder %v2618_v15, 1.0  ;;  %v2452_v58 = vld [vmem:[#allocation2 + $0xb0] sm:$0xff]  }
  0x42   :  { %2359 = vst [vmem:[#allocation2 + $0xa8] sm:$0xff] %v2222_v41   ;;  %vm4068_vm9 = vcmp.eq.f32.partialorder %v2728_v43, 4.0  ;;  %vm4069_vm4 = vcmp.eq.f32.partialorder %v2725_v42, 3.0  ;;  %vm220_vm0 = vcmp.eq.f32.partialorder %v2620_v16, 1.0  ;;  %vm4070_vm10 = vcmp.eq.f32.partialorder %v2618_v15, 5.0  ;;  %v2453_v7 = vld [vmem:[#allocation2 + $0x70] sm:$0xff]   ;;  %1020 = vmatpush1.bf16.msra.mxu1 %v2452_v58 }
  0x43   :  { %v428_v61 = vsel %vm4068_vm9, %v2849_v11, %v422_v45  ;;  %v433_v30 = vsel %vm4069_vm4, %v2820_v36, %v427_v27  ;;  %v555_v62 = vsel %vm4070_vm10, %v2642_v39, %v2879_v31  ;;  %vm4071_vm1 = vcmp.eq.f32.partialorder %v2728_v43, 3.0  ;;  %2384 = vmatprep.subr.bf16.mxu0 %v2453_v7  ;;  %1021 = vmatprep.subr.bf16.mxu1 %v2555_v0 }
  0x44   :  { %v434_v63 = vsel %vm4071_vm1, %v2822_v37, %v428_v61  ;;  %vm225_vm2 = vcmp.eq.f32.partialorder %v2618_v15, 2.0  ;;  %vm4072_vm9 = vcmp.eq.f32.partialorder %v2620_v16, 5.0  ;;  %v3082_v5 = vsel %vm227_vm7, %v2690_v23, %v2827_v48 }
  0x45   :  { %v556_v1 = vsel %vm4072_vm9, %v2644_v40, %v550_v26  ;;  %v2182_v10 = vpack.c.bf16 %v434_v63, %v433_v30  ;;  %vm226_vm10 = vcmp.eq.f32.partialorder %v2620_v16, 2.0  ;;  %vm4073_vm4 = vcmp.eq.f32.partialorder %v2618_v15, 3.0  ;;  %v2454_v41 = vld [vmem:[#allocation2 + $0x30] sm:$0xff]  }
  0x46   :  { %v237_v31 = vsel %vm4073_vm4, %v2669_v8, 0.0  ;;  %vm4074_vm1 = vcmp.eq.f32.partialorder %v2620_v16, 3.0  ;;  %v2217_v34 = vpack.c.bf16 %v556_v1, %v555_v62  ;;  %vm4075_vm9 = vcmp.eq.f32.partialorder %v2622_v17, 6.0  ;;  %2385 = vmatpush3.bf16.msra.mxu0 %v2454_v41 }
  0x47   :  { %v238_v14 = vsel %vm4074_vm1, %v2672_v9, 0.0  ;;  %v243_v48 = vsel %vm225_vm2, %v2660_v59, %v237_v31  ;;  %v413_v35 = vsel %vm4075_vm9, %v2734_v46, 0.0  ;;  %2351 = vst [vmem:[#allocation2 + $0x68] sm:$0xff] %v2182_v10   ;;  %vm4076_vm4 = vcmp.eq.f32.partialorder %v2624_v18, 6.0 }
  0x48   :  { %v244_v22 = vsel %vm226_vm10, %v2662_v60, %v238_v14  ;;  %v249_v51 = vsel %vm219_vm11, %v2656_v55, %v243_v48  ;;  %v414_v29 = vsel %vm4076_vm4, %v2737_v47, 0.0  ;;  %vm4077_vm1 = vcmp.eq.f32.partialorder %v2622_v17, 5.0  ;;  %2358 = vst [vmem:[#allocation2 + $0xa0] sm:$0xff] %v2217_v34  }
  0x49   :  { %v250_v52 = vsel %vm220_vm0, %v2658_v56, %v244_v22  ;;  %v419_v26 = vsel %vm4077_vm1, %v2678_v19, %v413_v35  ;;  %v255_v33 = vsel %vm213_vm5, %v2642_v39, %v249_v51  ;;  %vm4078_vm9 = vcmp.eq.f32.partialorder %v2624_v18, 5.0  ;;  %v2455_v62 = vld [vmem:[#allocation2 + $0xa8] sm:$0xff]  }
  0x4a   :  { %v256_v44 = vsel %vm214_vm14, %v2644_v40, %v250_v52  ;;  %v420_v45 = vsel %vm4078_vm9, %v2680_v20, %v414_v29  ;;  %vm4079_vm4 = vcmp.eq.f32.partialorder %v2622_v17, 4.0  ;;  %vm4080_vm1 = vcmp.eq.f32.partialorder %v2624_v18, 4.0  ;;  %1022 = vmatpush1.bf16.msra.mxu1 %v2455_v62 }
  0x4b   :  { %v425_v27 = vsel %vm4079_vm4, %v2690_v23, %v419_v26  ;;  %v2142_v58 = vpack.c.bf16 %v256_v44, %v255_v33  ;;  %v426_v61 = vsel %vm4080_vm1, %v2692_v24, %v420_v45  ;;  %vm211_vm5 = vcmp.eq.f32.partialorder %v2725_v42, 0.0  ;;  %1023 = vmatprep.subr.bf16.mxu1 %v2555_v0 }
  0x4c   :  { %v431_v30 = vsel %vm227_vm7, %v2652_v53, %v425_v27  ;;  %v432_v7 = vsel %vm228_vm6, %v2654_v54, %v426_v61  ;;  %vm212_vm14 = vcmp.eq.f32.partialorder %v2728_v43, 0.0  ;;  %v253_v63 = vsel %vm211_vm5, %v2820_v36, %v2927_v49 }
  0x4d   :  { %v3142_v1 = vsel %vm228_vm6, %v2692_v24, %v2867_v21  ;;  %2343 = vst [vmem:[#allocation2 + $0x28] sm:$0xff] %v2142_v58   ;;  %v2177_v10 = vpack.c.bf16 %v432_v7, %v431_v30  ;;  %v254_v31 = vsel %vm212_vm14, %v2822_v37, %v2932_v50  ;;  %v535_v14 = vsel %vm529_vm15, %v2882_v32, 0.0 }
  0x4e   :  { %v536_v48 = vsel %vm530_vm8, %v2885_v28, 0.0  ;;  %v2137_v49 = vpack.c.bf16 %v254_v31, %v253_v63  ;;  %v541_v21 = vsel %vm469_vm3, %v2840_v2, %v535_v14  ;;  %vm4081_vm9 = vcmp.eq.f32.partialorder %v2728_v43, 7.0  ;;  %v2456_v29 = vld [vmem:[#allocation2 + $0x68] sm:$0xff]  }
  0x4f   :  { %v542_v22 = vsel %vm4081_vm9, %v2842_v4, %v536_v48  ;;  %vm4082_vm4 = vcmp.eq.f32.partialorder %v2618_v15, 5.0  ;;  %2350 = vst [vmem:[#allocation2 + $0x60] sm:$0xff] %v2177_v10   ;;  %v547_v34 = vsel %vm409_vm12, %v2847_v57, %v541_v21  ;;  %vm4083_vm1 = vcmp.eq.f32.partialorder %v2728_v43, 6.0  ;;  %v2458_v45 = vld [vmem:[#allocation2 + $0xa0] sm:$0xff]   ;;  %2386 = vmatprep.subr.bf16.mxu0 %v2456_v29 }
  0x50   :  { %v357_v50 = vsel %vm4082_vm4, %v2669_v8, 0.0  ;;  %v548_v35 = vsel %vm4083_vm1, %v2849_v11, %v542_v22  ;;  %vm4084_vm5 = vcmp.eq.f32.partialorder %v2620_v16, 5.0  ;;  %2342 = vst [vmem:[#allocation2 + $0x20] sm:$0xff] %v2137_v49   ;;  %vm4085_vm14 = vcmp.eq.f32.partialorder %v2725_v42, 5.0  ;;  %1024 = vmatpush1.bf16.msra.mxu1 %v2458_v45 }
  0x51   :  { %v358_v51 = vsel %vm4084_vm5, %v2672_v9, 0.0  ;;  %v363_v52 = vsel %vm291_vm13, %v2660_v59, %v357_v50  ;;  %v553_v26 = vsel %vm4085_vm14, %v2820_v36, %v547_v34  ;;  %vm4086_vm9 = vcmp.eq.f32.partialorder %v2728_v43, 5.0  ;;  %1025 = vmatprep.subr.bf16.mxu1 %v2555_v0 }
  0x52   :  { %v554_v41 = vsel %vm4086_vm9, %v2822_v37, %v548_v35  ;;  %vm4087_vm4 = vcmp.eq.f32.partialorder %v2620_v16, 4.0  ;;  %vm4088_vm1 = vcmp.eq.f32.partialorder %v2618_v15, 3.0  ;;  %vm4089_vm5 = vcmp.eq.f32.partialorder %v2620_v16, 3.0 }
  0x53   :  { %v364_v33 = vsel %vm4087_vm4, %v2662_v60, %v358_v51  ;;  %v369_v44 = vsel %vm4088_vm1, %v2656_v55, %v363_v52  ;;  %v2212_v27 = vpack.c.bf16 %v554_v41, %v553_v26  ;;  %vm209_vm14 = vcmp.eq.f32.partialorder %v2622_v17, 0.0 }
  0x54   :  { %v370_v58 = vsel %vm4089_vm5, %v2658_v56, %v364_v33  ;;  %v375_v61 = vsel %vm225_vm2, %v2642_v39, %v369_v44  ;;  %vm210_vm9 = vcmp.eq.f32.partialorder %v2624_v18, 0.0  ;;  %v233_v62 = vsel %vm227_vm7, %v2734_v46, 0.0  ;;  %v2457_v48 = vld [vmem:[#allocation2 + $0x28] sm:$0xff]  }
  0x55   :  { %v376_v30 = vsel %vm226_vm10, %v2644_v40, %v370_v58  ;;  %v234_v7 = vsel %vm228_vm6, %v2737_v47, 0.0  ;;  %2357 = vst [vmem:[#allocation2 + $0x98] sm:$0xff] %v2212_v27   ;;  %vm4090_vm4 = vcmp.eq.f32.partialorder %v2622_v17, 2.0  ;;  %vm4091_vm1 = vcmp.eq.f32.partialorder %v2624_v18, 2.0  ;;  %2387 = vmatpush3.bf16.msra.mxu0 %v2457_v48 }
  0x56   :  { %v2172_v63 = vpack.c.bf16 %v376_v30, %v375_v61  ;;  %v239_v10 = vsel %vm4090_vm4, %v2678_v19, %v233_v62  ;;  %v240_v31 = vsel %vm4091_vm1, %v2680_v20, %v234_v7  ;;  %vm4092_vm5 = vcmp.eq.f32.partialorder %v2622_v17, 8.0  ;;  %v2459_v29 = vld [vmem:[#allocation2 + $0x60] sm:$0xff]  }
  0x57   :  { %v533_v14 = vsel %vm4092_vm5, %v2734_v46, 0.0  ;;  %vm4093_vm6 = vcmp.eq.f32.partialorder %v2622_v17, 1.0  ;;  %vm4094_vm7 = vcmp.eq.f32.partialorder %v2624_v18, 1.0  ;;  %vm4095_vm4 = vcmp.eq.f32.partialorder %v2624_v18, 8.0  ;;  %v2460_v45 = vld [vmem:[#allocation2 + $0x20] sm:$0xff]   ;;  %2388 = vmatprep.subr.bf16.mxu0 %v2459_v29 }
  0x58   :  { %v245_v49 = vsel %vm4093_vm6, %v2690_v23, %v239_v10  ;;  %v246_v21 = vsel %vm4094_vm7, %v2692_v24, %v240_v31  ;;  %v534_v22 = vsel %vm4095_vm4, %v2737_v47, 0.0  ;;  %vm4096_vm1 = vcmp.eq.f32.partialorder %v2622_v17, 7.0  ;;  %2349 = vst [vmem:[#allocation2 + $0x58] sm:$0xff] %v2172_v63  }
  0x59   :  { %v539_v50 = vsel %vm4096_vm1, %v2678_v19, %v533_v14  ;;  %v251_v34 = vsel %vm209_vm14, %v2652_v53, %v245_v49  ;;  %v252_v35 = vsel %vm210_vm9, %v2654_v54, %v246_v21  ;;  %vm4097_vm5 = vcmp.eq.f32.partialorder %v2624_v18, 7.0  ;;  %2389 = vmatpush3.bf16.msra.mxu0 %v2460_v45 }
  0x5a   :  { %v540_v51 = vsel %vm4097_vm5, %v2680_v20, %v534_v22  ;;  %vm4098_vm6 = vcmp.eq.f32.partialorder %v2622_v17, 6.0  ;;  %v2132_v26 = vpack.c.bf16 %v252_v35, %v251_v34  ;;  %vm4099_vm7 = vcmp.eq.f32.partialorder %v2624_v18, 6.0 }
  0x5b   :  { %v545_v52 = vsel %vm4098_vm6, %v2690_v23, %v539_v50  ;;  %v546_v41 = vsel %vm4099_vm7, %v2692_v24, %v540_v51  ;;  %vm4100_vm14 = vcmp.eq.f32.partialorder %v2622_v17, 5.0  ;;  %vm4101_vm9 = vcmp.eq.f32.partialorder %v2725_v42, 5.0 }
  0x5c   :  { %v551_v33 = vsel %vm4100_vm14, %v2652_v53, %v545_v52  ;;  %v355_v44 = vsel %vm4101_vm9, %v2882_v32, 0.0  ;;  %vm4102_vm4 = vcmp.eq.f32.partialorder %v2624_v18, 5.0  ;;  %vm4103_vm1 = vcmp.eq.f32.partialorder %v2728_v43, 5.0  ;;  %2341 = vst [vmem:[#allocation2 + $0x18] sm:$0xff] %v2132_v26   ;;  %v2461_v49 = vld [vmem:[#allocation2 + $0x98] sm:$0xff]  }
  0x5d   :  { %v552_v27 = vsel %vm4102_vm4, %v2654_v54, %v546_v41  ;;  %v356_v58 = vsel %vm4103_vm1, %v2885_v28, 0.0  ;;  %vm4104_vm5 = vcmp.eq.f32.partialorder %v2725_v42, 4.0  ;;  %vm4105_vm6 = vcmp.eq.f32.partialorder %v2622_v17, 2.0  ;;  %1026 = vmatpush1.bf16.msra.mxu1 %v2461_v49 }
  0x5e   :  { %v361_v61 = vsel %vm4104_vm5, %v2840_v2, %v355_v44  ;;  %v371_v30 = vsel %vm4105_vm6, %v2652_v53, %v3082_v5  ;;  %v2207_v62 = vpack.c.bf16 %v552_v27, %v551_v33  ;;  %vm4106_vm7 = vcmp.eq.f32.partialorder %v2728_v43, 4.0  ;;  %1027 = vmatprep.subr.bf16.mxu1 %v2555_v0 }
  0x5f   :  { %v362_v7 = vsel %vm4106_vm7, %v2842_v4, %v356_v58  ;;  %vm4107_vm14 = vcmp.eq.f32.partialorder %v2725_v42, 3.0  ;;  %v57_v10 = vadd.f32 1.0, %v2694_v25  ;;  %vm4108_vm9 = vcmp.eq.f32.partialorder %v2728_v43, 3.0  ;;  %v2462_v35 = vld [vmem:[#allocation2 + $0x58] sm:$0xff]  }
  0x60   :  { %v367_v63 = vsel %vm4107_vm14, %v2847_v57, %v361_v61  ;;  %v368_v31 = vsel %vm4108_vm9, %v2849_v11, %v362_v7  ;;  %vm4109_vm4 = vcmp.eq.f32.partialorder %v2725_v42, 2.0  ;;  %v58_v14 = vadd.f32 1.0, %v3023_v13  ;;  %2356 = vst [vmem:[#allocation2 + $0x90] sm:$0xff] %v2207_v62   ;;  %2390 = vmatprep.subr.bf16.mxu0 %v2462_v35 }
  0x61   :  { %v373_v5 = vsel %vm4109_vm4, %v2820_v36, %v367_v63  ;;  %vm4110_vm1 = vcmp.eq.f32.partialorder %v2618_v15, 7.0  ;;  %vm4111_vm5 = vcmp.eq.f32.partialorder %v2728_v43, 2.0  ;;  %2511 = vrcp.f32 %v57_v10 }
  0x62   :  { %v477_v48 = vsel %vm4110_vm1, %v2669_v8, 0.0  ;;  %v374_v25 = vsel %vm4111_vm5, %v2822_v37, %v368_v31  ;;  %vm4112_vm6 = vcmp.eq.f32.partialorder %v2620_v16, 7.0  ;;  %vm4113_vm7 = vcmp.eq.f32.partialorder %v2618_v15, 6.0 }
  0x63   :  { %v478_v21 = vsel %vm4112_vm6, %v2672_v9, 0.0  ;;  %v483_v13 = vsel %vm4113_vm7, %v2660_v59, %v477_v48  ;;  %v2167_v22 = vpack.c.bf16 %v374_v25, %v373_v5  ;;  %2513 = vrcp.f32 %v58_v14  ;;  %v2463_v58 = vld [vmem:[#allocation2 + $0x18] sm:$0xff]  }
  0x64   :  { %vm4114_vm14 = vcmp.eq.f32.partialorder %v2620_v16, 6.0  ;;  %vm4115_vm9 = vcmp.eq.f32.partialorder %v2618_v15, 5.0  ;;  %vm4116_vm4 = vcmp.eq.f32.partialorder %v2620_v16, 5.0  ;;  %vm4117_vm1 = vcmp.eq.f32.partialorder %v2624_v18, 2.0  ;;  %2391 = vmatpush3.bf16.msra.mxu0 %v2463_v58 }
  0x65   :  { %v484_v50 = vsel %vm4114_vm14, %v2662_v60, %v478_v21  ;;  %v489_v34 = vsel %vm4115_vm9, %v2656_v55, %v483_v13  ;;  %v372_v29 = vsel %vm4117_vm1, %v2654_v54, %v3142_v1  ;;  %2515 = vpow2.f32 %v2640_v38  ;;  %2348 = vst [vmem:[#allocation2 + $0x50] sm:$0xff] %v2167_v22  }
  0x66   :  { %v490_v51 = vsel %vm4116_vm4, %v2658_v56, %v484_v50  ;;  %v495_v52 = vsel %vm291_vm13, %v2642_v39, %v489_v34  ;;  %vm4118_vm5 = vcmp.eq.f32.partialorder %v2620_v16, 4.0  ;;  %v2162_v41 = vpack.c.bf16 %v372_v29, %v371_v30 }
  0x67   :  { %v496_v26 = vsel %vm4118_vm5, %v2644_v40, %v490_v51  ;;  %v1861_v33 = vmul.f32 -1.442695, %v2616_v12  ;;  %v475_v44 = vsel %vm469_vm3, %v2882_v32, 0.0  ;;  %vm4119_vm6 = vcmp.eq.f32.partialorder %v2728_v43, 7.0  ;;  %vm4122_vm9 = vmmov %vm4118_vm5  ;;  %v2464_v31 = vld [vmem:[#allocation2 + $0x90] sm:$0xff]  }
  0x68   :  { %v2202_v45 = vpack.c.bf16 %v496_v26, %v495_v52  ;;  %v476_v38 = vsel %vm4119_vm6, %v2885_v28, 0.0  ;;  %v481_v1 = vsel %vm409_vm12, %v2840_v2, %v475_v44  ;;  %v297_v27 = vsel %vm291_vm13, %v2669_v8, 0.0  ;;  %2347 = vst [vmem:[#allocation2 + $0x48] sm:$0xff] %v2162_v41   ;;  %1028 = vmatpush1.bf16.msra.mxu1 %v2464_v31  ;;  %v2549_v41 = vld [vmem:[%s3990_s0 + $0x20] sm:$0xff]  ;;  %v2551_v31 = vld [vmem:[%s3990_s0 + $0x10] sm:$0xff] }
  0x69   :  { %2517 = vpow2.f32 %v1861_v33  ;;  %vm4120_vm7 = vcmp.eq.f32.partialorder %v2728_v43, 6.0  ;;  %vm4121_vm14 = vcmp.eq.f32.partialorder %v2725_v42, 5.0  ;;  %v298_v30 = vsel %vm4122_vm9, %v2672_v9, 0.0  ;;  %1029 = vmatprep.subr.bf16.mxu1 %v2555_v0 }
  0x6a   :  { %v482_v12 = vsel %vm4120_vm7, %v2842_v4, %v476_v38  ;;  %v487_v61 = vsel %vm4121_vm14, %v2847_v57, %v481_v1  ;;  %2355 = vst [vmem:[#allocation2 + $0x88] sm:$0xff] %v2202_v45   ;;  %vm4123_vm12 = vcmp.eq.f32.partialorder %v2728_v43, 5.0  ;;  %vm4124_vm13 = vcmp.eq.f32.partialorder %v2725_v42, 4.0 }
  0x6b   :  { %v488_v62 = vsel %vm4123_vm12, %v2849_v11, %v482_v12  ;;  %v493_v7 = vsel %vm4124_vm13, %v2820_v36, %v487_v61  ;;  %vm4125_vm4 = vcmp.eq.f32.partialorder %v2618_v15, 3.0  ;;  %vm4126_vm1 = vcmp.eq.f32.partialorder %v2620_v16, 3.0 }
  0x6c   :  { %v303_v63 = vsel %vm4125_vm4, %v2660_v59, %v297_v27  ;;  %v304_v10 = vsel %vm4126_vm1, %v2662_v60, %v298_v30  ;;  %vm4127_vm5 = vcmp.eq.f32.partialorder %v2728_v43, 4.0  ;;  %vm651_vm6 = vcmp.eq.f32.partialorder %v2618_v15, 10.0  ;;  %v2465_v35 = vld [vmem:[#allocation2 + $0x50] sm:$0xff]  }
  0x6d   :  { %v494_v5 = vsel %vm4127_vm5, %v2822_v37, %v488_v62  ;;  %v309_v14 = vsel %vm225_vm2, %v2656_v55, %v303_v63  ;;  %v310_v48 = vsel %vm226_vm10, %v2658_v56, %v304_v10  ;;  %v1858_v13 = vmul.f32 -1.442695, %v2599_v3  ;;  %2392 = vmatprep.subr.bf16.mxu0 %v2465_v35  ;;  %v2554_v35 = vld [vmem:[%s3990_s0 + $0x8] sm:$0xff] }
  0x6e   :  { %v2197_v49 = vpack.c.bf16 %v494_v5, %v493_v7  ;;  %v315_v25 = vsel %vm219_vm11, %v2642_v39, %v309_v14  ;;  %v316_v21 = vsel %vm220_vm0, %v2644_v40, %v310_v48  ;;  %v1859_v50 = vmul.f32 -1.442695, %v2605_v6  ;;  %v2485_v14 = vld [vmem:[%s3991_s1 + $0x2c] ss:$16 sps:$4 sm:$0xff]  }
  0x6f   :  { %v2157_v22 = vpack.c.bf16 %v316_v21, %v315_v25  ;;  %vm652_vm2 = vcmp.eq.f32.partialorder %v2620_v16, 10.0  ;;  %v657_v34 = vsel %vm651_vm6, %v2669_v8, 0.0  ;;  %2519 = vpow2.f32 %v1858_v13  ;;  %v2468_v63 = vld [vmem:[#allocation2 + $0x48] sm:$0xff]  }
  0x70   :  { %2354 = vst [vmem:[#allocation2 + $0x80] sm:$0xff] %v2197_v49   ;;  %v658_v51 = vsel %vm652_vm2, %v2672_v9, 0.0  ;;  %vm4128_vm0 = vcmp.eq.f32.partialorder %v2618_v15, 9.0  ;;  %2521 = vpow2.f32 %v1859_v50  ;;  %vm4129_vm11 = vcmp.eq.f32.partialorder %v2620_v16, 9.0  ;;  %v2512_v9 = vpop.eup %2511 }
  0x71   :  { %v663_v52 = vsel %vm4128_vm0, %v2660_v59, %v657_v34  ;;  %2346 = vst [vmem:[#allocation2 + $0x40] sm:$0xff] %v2157_v22   ;;  %v664_v3 = vsel %vm4129_vm11, %v2662_v60, %v658_v51  ;;  %vm4130_vm10 = vcmp.eq.f32.partialorder %v2618_v15, 8.0  ;;  %vm649_vm7 = vcmp.eq.f32.partialorder %v2725_v42, 10.0  ;;  %v2467_v29 = vld [vmem:[#allocation2 + $0x88] sm:$0xff]   ;;  %v2514_v26 = vpop.eup %2513  ;;  %v2553_v22 = vld [vmem:[%s3990_s0] sm:$0xff] }
  0x72   :  { %v669_v6 = vsel %vm4130_vm10, %v2656_v55, %v663_v52  ;;  %vm4131_vm14 = vcmp.eq.f32.partialorder %v2620_v16, 8.0  ;;  %vm4132_vm9 = vcmp.eq.f32.partialorder %v2618_v15, 7.0  ;;  %vm650_vm12 = vcmp.eq.f32.partialorder %v2728_v43, 10.0  ;;  %v2516_v44 = vpop.eup %2515  ;;  %1030 = vmatpush1.bf16.msra.mxu1 %v2467_v29  ;;  %v2487_v34 = vld [vmem:[%s3991_s1 + $0x28] ss:$16 sps:$4 sm:$0xff]  }
  0x73   :  { %v670_v8 = vsel %vm4131_vm14, %v2658_v56, %v664_v3  ;;  %v675_v59 = vsel %vm4132_vm9, %v2642_v39, %v669_v6  ;;  %vm4133_vm13 = vcmp.eq.f32.partialorder %v2620_v16, 7.0  ;;  %v655_v55 = vsel %vm649_vm7, %v2882_v32, 0.0  ;;  %v2550_v16 = vld [vmem:[%s3990_s0 + $0x28] sm:$0xff]  ;;  %1031 = vmatprep.subr.bf16.mxu1 %v2555_v0  ;;  %v2481_v29 = vld [vmem:[%s3991_s1 + $0x20] ss:$16 sps:$4 sm:$0xff]  }
  0x74   :  { %v676_v60 = vsel %vm4133_vm13, %v2644_v40, %v670_v8  ;;  %v75_v56 = vmul.f32 %v2549_v41, %v2512_v9  ;;  %v656_v15 = vsel %vm650_vm12, %v2885_v28, 0.0  ;;  %vm4134_vm4 = vcmp.eq.f32.partialorder %v2725_v42, 9.0  ;;  %v2478_v9 = vld [vmem:[%s3991_s1 + $0x24] ss:$16 sps:$4 sm:$0xff]  }
  0x75   :  { %v2247_v33 = vpack.c.bf16 %v676_v60, %v675_v59  ;;  %v661_v39 = vsel %vm4134_vm4, %v2840_v2, %v655_v55  ;;  %v76_v40 = vmul.f32 %v2550_v16, %v2514_v26  ;;  %vm4135_vm1 = vcmp.eq.f32.partialorder %v2728_v43, 9.0  ;;  %v2473_v59 = vld [vmem:[%s3991_s1] ss:$16 sps:$4 sm:$0xff]  }
  0x76   :  { %v662_v32 = vsel %vm4135_vm1, %v2842_v4, %v656_v15  ;;  %v667_v45 = vsel %vm529_vm15, %v2847_v57, %v661_v39  ;;  %vm647_vm5 = vcmp.eq.f32.partialorder %v2622_v17, 10.0  ;;  %v55_v28 = vadd.f32 1.0, %v2516_v44  ;;  %v2484_v4 = vld [vmem:[%s3991_s1 + $0xc] ss:$16 sps:$4 sm:$0xff]   ;;  %v2518_v12 = vpop.eup %2517 }
  0x77   :  { %2364 = vst [vmem:[#allocation2 + $0xd0] sm:$0xff] %v2247_v33   ;;  %v668_v2 = vsel %vm530_vm8, %v2849_v11, %v662_v32  ;;  %v673_v38 = vsel %vm469_vm3, %v2820_v36, %v667_v45  ;;  %vm648_vm6 = vcmp.eq.f32.partialorder %v2624_v18, 10.0  ;;  %v2127_v57 = vpack.c.bf16 %v76_v40, %v75_v56  ;;  %v2470_v1 = vld [vmem:[#allocation2 + $0x80] sm:$0xff]  }
  0x78   :  { %vm4136_vm15 = vcmp.eq.f32.partialorder %v2728_v43, 7.0  ;;  %v653_v58 = vsel %vm647_vm5, %v2734_v46, 0.0  ;;  %2523 = vrcp.f32 %v55_v28  ;;  %v654_v42 = vsel %vm648_vm6, %v2737_v47, 0.0  ;;  %1032 = vmatpush1.bf16.msra.mxu1 %v2470_v1  ;;  %v2471_v3 = vld [vmem:[#allocation2 + $0x40] sm:$0xff]  }
  0x79   :  { %v674_v27 = vsel %vm4136_vm15, %v2822_v37, %v668_v2  ;;  %vm4137_vm3 = vcmp.eq.f32.partialorder %v2622_v17, 9.0  ;;  %2340 = vst [vmem:[#allocation2 + $0x10] sm:$0xff] %v2127_v57   ;;  %v56_v61 = vadd.f32 1.0, %v2518_v12  ;;  %vm4138_vm8 = vcmp.eq.f32.partialorder %v2624_v18, 9.0  ;;  %1043 = vmatprep.subr.bf16.mxu1 %v2555_v0 }
  0x7a   :  { %v2242_v11 = vpack.c.bf16 %v674_v27, %v673_v38  ;;  %v659_v36 = vsel %vm4137_vm3, %v2678_v19, %v653_v58  ;;  %v660_v30 = vsel %vm4138_vm8, %v2680_v20, %v654_v42  ;;  %vm4139_vm2 = vcmp.eq.f32.partialorder %v2622_v17, 8.0 }
  0x7b   :  { %v665_v43 = vsel %vm4139_vm2, %v2690_v23, %v659_v36  ;;  %vm961_vm0 = vcmask 392192   ;;  %vm4140_vm11 = vcmp.eq.f32.partialorder %v2624_v18, 8.0  ;;  %vm4141_vm10 = vcmp.eq.f32.partialorder %v2622_v17, 7.0 }
  0x7c   :  { %2363 = vst [vmem:[#allocation2 + $0xc8] sm:$0xff] %v2242_v11   ;;  %v666_v46 = vsel %vm4140_vm11, %v2692_v24, %v660_v30  ;;  %v671_v19 = vsel %vm4141_vm10, %v2652_v53, %v665_v43  ;;  %1959 = vmatprep.mubr.msk.bf16.mxu1 %vm961_vm0, %v2484_v4  ;;  %2525 = vrcp.f32 %v56_v61  ;;  %vm4142_vm7 = vcmp.eq.f32.partialorder %v2624_v18, 7.0  ;;  %v2520_v47 = vpop.eup %2519 }
  0x7d   :  { %v672_v20 = vsel %vm4142_vm7, %v2654_v54, %v666_v46  ;;  %v2522_v62 = vpop.eup %2521  ;;  %v53_v7 = vadd.f32 1.0, %v2520_v47  ;;  %v2482_v54 = vld [vmem:[%s3991_s1 + $0x8] ss:$16 sps:$4 sm:$0xff]   ;;  %v2556_v44 = vmov 0.0   ;;  %vm2557_vm14 = vmmov 0  }
  0x7e   :  { %v2237_v23 = vpack.c.bf16 %v672_v20, %v671_v19  ;;  %v2476_v37 = vld [vmem:[#allocation2 + $0xd0] sm:$0xff]   ;;  %v54_v10 = vadd.f32 1.0, %v2522_v62 }
  0x7f   :  { %1044 = vmatpush2.bf16.msra.mxu1 %v2476_v37  ;;  %2527 = vrcp.f32 %v53_v7 }
  0x80   :  { %2362 = vst [vmem:[#allocation2 + $0xc0] sm:$0xff] %v2237_v23   ;;  %v2466_v24 = vld [vmem:[#allocation2 + $0x10] sm:$0xff]   ;;  %1045 = vmatprep.subr.bf16.mxu1 %v2555_v0  ;;  %2529 = vrcp.f32 %v54_v10 }
  0x81   :  { %2393 = vmatpush3.bf16.msra.mxu0 %v2466_v24 }
  0x82   :  { %2394 = vmatprep.subr.bf16.mxu0 %v2468_v63 }
  0x83   :  { %v2477_v17 = vld [vmem:[#allocation2 + $0xc8] sm:$0xff]  }
  0x84   :  { %1046 = vmatpush2.bf16.msra.mxu1 %v2477_v17 }
  0x85   :  { %1047 = vmatprep.subr.bf16.mxu1 %v2555_v0  ;;  %v2524_v18 = vpop.eup %2523  ;;  %v2552_v0 = vld [vmem:[%s3990_s0 + $0x18] sm:$0xff] }
  0x86   :  { %v73_v5 = vmul.f32 %v2551_v31, %v2524_v18  ;;  %v1647_v31 = vlaneseq }
  0x87   :  { %v2480_v53 = vld [vmem:[#allocation2 + $0xc0] sm:$0xff]  }
  0x88   :  { %1048 = vmatpush2.bf16.msra.mxu1 %v2480_v53 }
  0x89   :  { %v2526_v48 = vpop.eup %2525  ;;  %2435 = vmatprep.subr.bf16.mxu1 %v2556_v44 }
  0x8a   :  { %v74_v49 = vmul.f32 %v2552_v0, %v2526_v48 }
  0x8b   :  { %1050 = vmatmul.mubr.bf16.vlgmr.msra.gmra.mxu1 %v2482_v54 }
  0x8c   :  { %v2122_v25 = vpack.c.bf16 %v74_v49, %v73_v5  ;;  %1960 = vmatprep.mubr.msk.bf16.mxu1 %vm961_vm0, %v2485_v14  ;;  %v2528_v21 = vpop.eup %2527  ;;  %v1157_v5 = vld [vmem:[%s3994_s4] sm:$0x3f]  ;;  %v2558_v14 = vmov 1983009808  }
  0x8d   :  { %v2530_v13 = vpop.eup %2529  ;;  %v71_v50 = vmul.f32 %v2553_v22, %v2528_v21  ;;  %v1645_v48 = vunpack.c.l.s4 %v2558_v14  ;;  %v1643_v21 = vcombine.high %v1157_v5, %v1157_v5 }
  0x8e   :  { %2339 = vst [vmem:[#allocation2 + $0x8] sm:$0xff] %v2122_v25   ;;  %v72_v51 = vmul.f32 %v2554_v35, %v2530_v13  ;;  %v1648_v25 = vshrl.u32 %v1647_v31, 7 }
  0x8f   :  { %v1646_v13 = vunpack.c.0.s8 %v1645_v48 }
  0x90   :  { %v2117_v52 = vpack.c.bf16 %v72_v51, %v71_v50 }
  0x91   :  { %v1649_v50 = vsub.s32 %v1646_v13, %v1648_v25 }
  0x92   :  { %2118 = vst [vmem:[#allocation2] sm:$0xff] %v2117_v52  }
  0x93   :  { %1058 = vmatmul.mubr.bf16.gmra.mxu1 %v2487_v34  ;;  %v3474_v35 = vrot.slane %v1643_v21, %v1649_v50  ;;  %v3476_v51 = vrot.slane %v1157_v5, %v1649_v50 }
  0x94   :  { %2439 = vmatprep.mubr.msk.bf16.mxu1 %vm2557_vm14, %v2556_v44 }
  0x95   :  { %v2469_v6 = vld [vmem:[#allocation2 + $0x8] sm:$0xff]  }
  0x96   :  { %2395 = vmatpush3.bf16.msra.mxu0 %v2469_v6 }
  0x97   :  { %2396 = vmatprep.subr.bf16.mxu0 %v2471_v3  ;;  %v1658_v3 = vcombine.high %v3476_v51, %v3476_v51 }
  0x99   :  { %v2472_v8 = vld [vmem:[#allocation2] sm:$0xff]  }
  0x9a   :  { %2397 = vmatpush3.bf16.msra.mxu0 %v2472_v8 }
  0x9d   :  { %1001 = vmatmul.mubr.bf16.vlgmr.msra.gmra.mxu0 %v2473_v59 }
  0x9e   :  { %1008 = vmatprep.mubr.bf16.mxu0 %v2478_v9 }
  0xa5   :  { %1009 = vmatmul.mubr.bf16.gmra.mxu0 %v2481_v29 }
  0xa6   :  { %1805 = vmatprep.mubr.bf16.mxu0 %v1658_v3 }
 0x14b   :  { %v1051_v60 = vpop.f32.mrf.mxu1 }
 0x14d   :  { %v1053_v55 = vpop.f32.mrf.mxu1 }
 0x14e   :  { %v1146_v55 = vpop.permute.xlu1 %1145 }
 0x14f   :  { %v1054_v26 = vpop.f32.mrf.mxu1 }
 0x151   :  { %v1056_v41 = vpop.f32.mrf.mxu1 }
 0x152   :  { %v1151_v41 = vpop.permute.xlu1 %1150 }
 0x153   :  { %v1059_v56 = vpop.f32.mrf.mxu1 }
 0x155   :  { %v1061_v33 = vpop.f32.mrf.mxu1 }
 0x156   :  { %v1117_v33 = vpop.permute.xlu1 %1116 }
 0x157   :  { %v1062_v15 = vpop.f32.mrf.mxu1 }
 0x159   :  { %v1064_v39 = vpop.f32.mrf.mxu1 }
 0x15d   :  { %v2398_v16 = vpop.f32.mrf.mxu0 }
 0x15f   :  { %v2399_v40 = vpop.f32.mrf.mxu0 }
 0x160   :  { %v2400_v4 = vadd.f32 %v2399_v40, %v2398_v16 }
 0x161   :  { %v2401_v32 = vpop.f32.mrf.mxu0 }
 0x162   :  { %v1052_v58 = vadd.f32 %v2400_v4, %v1051_v60 }
 0x163   :  { %v2402_v45 = vpop.f32.mrf.mxu0 }
 0x164   :  { %v2403_v2 = vadd.f32 %v2402_v45, %v2401_v32 }
 0x165   :  { %v2404_v28 = vpop.f32.mrf.mxu0 }
 0x166   :  { %v1055_v1 = vadd.f32 %v2403_v2, %v1054_v26  ;;  %v1122_v26 = vpop.permute.xlu0 %1121 }
 0x167   :  { %v2405_v38 = vpop.f32.mrf.mxu0 }
 0x168   :  { %v2406_v57 = vadd.f32 %v2405_v38, %v2404_v28  ;;  %v1074_v36 = vadd.f32 %v1055_v1, %v1052_v58 }
 0x169   :  { %v2407_v27 = vpop.f32.mrf.mxu0 }
 0x16a   :  { %v1060_v12 = vadd.f32 %v2406_v57, %v1059_v56  ;;  %v1127_v56 = vpop.permute.xlu0 %1126  ;;  %v1141_v57 = vpop.permute.xlu1 %1140 }
 0x16b   :  { %v2408_v11 = vpop.f32.mrf.mxu0 }
 0x16c   :  { %v2409_v42 = vadd.f32 %v2408_v11, %v2407_v27  ;;  %v1075_v61 = vadd.f32 %v1074_v36, %v1060_v12 }
 0x16e   :  { %v1063_v30 = vadd.f32 %v2409_v42, %v1062_v15  ;;  %v1112_v15 = vpop.permute.xlu0 %1111 }
 0x170   :  { %v1076_v43 = vadd.f32 %v1075_v61, %v1063_v30 }
 0x172   :  { %v1077_v46 = vrot.slane %v1076_v43, 4 }
 0x174   :  { %v1078_v19 = vadd.f32 %v1077_v46, %v1076_v43 }
 0x176   :  { %v1079_v20 = vrot.slane %v1078_v19, 2 }
 0x178   :  { %v1080_v23 = vadd.f32 %v1079_v20, %v1078_v19 }
 0x17a   :  { %v1081_v47 = vrot.slane %v1080_v23, 1 }
 0x17c   :  { %v1082_v37 = vadd.f32 %v1081_v47, %v1080_v23 }
 0x17e   :  { %v1084_v62 = vmul.f32 0.03125, %v1082_v37 }
 0x180   :  { %v1086_v7 = vsub.f32 %v1055_v1, %v1084_v62  ;;  %v1085_v63 = vsub.f32 %v1052_v58, %v1084_v62  ;;  %v1087_v10 = vsub.f32 %v1060_v12, %v1084_v62  ;;  %v1088_v24 = vsub.f32 %v1063_v30, %v1084_v62  ;;  %v1136_v1 = vpop.permute.xlu0 %1135 }
 0x182   :  { %v1089_v17 = vmul.f32 %v1085_v63, %v1085_v63  ;;  %v1090_v18 = vmul.f32 %v1086_v7, %v1086_v7  ;;  %v1091_v53 = vmul.f32 %v1087_v10, %v1087_v10  ;;  %v1092_v0 = vmul.f32 %v1088_v24, %v1088_v24 }
 0x184   :  { %v1093_v54 = vadd.f32 %v1090_v18, %v1089_v17 }
 0x186   :  { %v1094_v49 = vadd.f32 %v1093_v54, %v1091_v53 }
 0x188   :  { %v1095_v22 = vadd.f32 %v1094_v49, %v1092_v0 }
 0x18a   :  { %v1096_v34 = vrot.slane %v1095_v22, 4 }
 0x18c   :  { %v1097_v52 = vadd.f32 %v1096_v34, %v1095_v22 }
 0x18e   :  { %v1098_v6 = vrot.slane %v1097_v52, 2 }
 0x190   :  { %v1099_v8 = vadd.f32 %v1098_v6, %v1097_v52 }
 0x192   :  { %v1100_v59 = vrot.slane %v1099_v8, 1 }
 0x194   :  { %v1101_v9 = vadd.f32 %v1100_v59, %v1099_v8 }
 0x196   :  { %v1102_v29 = vmul.f32 0.03125, %v1101_v9 }
 0x198   :  { %v1103_v60 = vadd.f32 1e-05, %v1102_v29 }
 0x19a   :  { %2531 = vrsqrt.f32 %v1103_v60 }
 0x1a7   :  { %v2532_v39 = vpop.eup %2531 }
 0x1a8   :  { %v1107_v16 = vmul.f32 %v2532_v39, %v1087_v10  ;;  %v1108_v40 = vmul.f32 %v2532_v39, %v1088_v24  ;;  %v1106_v32 = vmul.f32 %v2532_v39, %v1086_v7  ;;  %v1105_v45 = vmul.f32 %v2532_v39, %v1085_v63 }
 0x1aa   :  { %v1131_v28 = vmul.f32 %v1122_v26, %v1107_v16  ;;  %v1132_v2 = vmul.f32 %v1127_v56, %v1108_v40  ;;  %v1130_v38 = vmul.f32 %v1117_v33, %v1106_v32  ;;  %v1129_v4 = vmul.f32 %v1112_v15, %v1105_v45 }
 0x1ac   :  { %v3480_v27 = vadd.f32 %v1146_v55, %v1131_v28  ;;  %v3482_v58 = vadd.f32 %v1151_v41, %v1132_v2  ;;  %v3484_v12 = vadd.f32 %v1141_v57, %v1130_v38  ;;  %v3486_v11 = vadd.f32 %v1136_v1, %v1129_v4 }
 0x1ae   :  { %v1963_v42 = vmul.f32 -1.442695, %v3480_v27  ;;  %v1971_v36 = vadd.f32 2.2, %v3480_v27  ;;  %v1964_v61 = vmul.f32 -1.442695, %v3482_v58 }
 0x1af   :  { %v1972_v30 = vadd.f32 2.2, %v3482_v58  ;;  %v1962_v43 = vmul.f32 -1.442695, %v3484_v12  ;;  %v1970_v46 = vadd.f32 2.2, %v3484_v12 }
 0x1b0   :  { %2533 = vpow2.f32 %v1963_v42  ;;  %v1212_v19 = vmul.f32 2.5, %v1971_v36  ;;  %v1961_v20 = vmul.f32 -1.442695, %v3486_v11  ;;  %v1969_v23 = vadd.f32 2.2, %v3486_v11 }
 0x1b1   :  { %2535 = vpow2.f32 %v1964_v61  ;;  %v1213_v47 = vmul.f32 2.5, %v1972_v30  ;;  %v1211_v37 = vmul.f32 2.5, %v1970_v46 }
 0x1b2   :  { %v3496_v62 = vfloor.f32 %v1212_v19  ;;  %2537 = vpow2.f32 %v1962_v43  ;;  %v1210_v7 = vmul.f32 2.5, %v1969_v23 }
 0x1b3   :  { %v3498_v63 = vfloor.f32 %v1213_v47  ;;  %v3500_v10 = vfloor.f32 %v1211_v37  ;;  %2539 = vpow2.f32 %v1961_v20 }
 0x1b4   :  { %v1220_v24 = vsub.f32 %v1212_v19, %v3496_v62  ;;  %v3503_v17 = vfloor.f32 %v1210_v7  ;;  %vm1528_vm9 = vcmp.eq.f32.partialorder %v3496_v62, 9.0  ;;  %vm1488_vm13 = vcmp.eq.f32.partialorder %v3496_v62, 8.0 }
 0x1b5   :  { %v1221_v18 = vsub.f32 %v1213_v47, %v3498_v63  ;;  %v1219_v53 = vsub.f32 %v1211_v37, %v3500_v10  ;;  %vm1529_vm12 = vcmp.eq.f32.partialorder %v3498_v63, 9.0  ;;  %vm1489_vm4 = vcmp.eq.f32.partialorder %v3498_v63, 8.0 }
 0x1b6   :  { %v1224_v54 = vmul.f32 %v1220_v24, %v1220_v24  ;;  %v1218_v31 = vsub.f32 %v1210_v7, %v3503_v17  ;;  %vm1568_vm1 = vcmp.eq.f32.partialorder %v3496_v62, 10.0  ;;  %vm1448_vm5 = vcmp.eq.f32.partialorder %v3496_v62, 7.0 }
 0x1b7   :  { %v1225_v5 = vmul.f32 %v1221_v18, %v1221_v18  ;;  %v1223_v14 = vmul.f32 %v1219_v53, %v1219_v53  ;;  %vm4045_vm6 = vcmp.eq.f32.partialorder %v3498_v63, 7.0  ;;  %vm4044_vm15 = vcmp.eq.f32.partialorder %v3496_v62, 6.0 }
 0x1b8   :  { %v1228_v48 = vmul.f32 %v1224_v54, %v1220_v24  ;;  %v1236_v0 = vadd.f32 %v1224_v54, %v1220_v24  ;;  %v3508_v49 = vmul.f32 %v1218_v31, %v1218_v31  ;;  %vm4043_vm3 = vcmp.eq.f32.partialorder %v3498_v63, 6.0 }
 0x1b9   :  { %v1229_v25 = vmul.f32 %v1225_v5, %v1221_v18  ;;  %v1237_v21 = vadd.f32 %v1225_v5, %v1221_v18  ;;  %v1227_v13 = vmul.f32 %v1223_v14, %v1219_v53  ;;  %v1235_v22 = vadd.f32 %v1223_v14, %v1219_v53 }
 0x1ba   :  { %v3510_v50 = vmul.f32 0.16666667, %v1228_v48  ;;  %v1240_v34 = vsub.f32 %v1236_v0, %v1228_v48  ;;  %v1252_v52 = vmul.f32 0.5, %v1228_v48  ;;  %v1226_v3 = vmul.f32 %v3508_v49, %v1218_v31 }
 0x1bb   :  { %v3513_v6 = vmul.f32 0.16666667, %v1229_v25  ;;  %v1241_v8 = vsub.f32 %v1237_v21, %v1229_v25  ;;  %v1253_v59 = vmul.f32 0.5, %v1229_v25  ;;  %v3515_v9 = vmul.f32 0.16666667, %v1227_v13 }
 0x1bc   :  { %v1244_v29 = vmul.f32 0.5, %v1240_v34  ;;  %v1256_v60 = vsub.f32 %v1252_v52, %v1224_v54  ;;  %v1264_v55 = vsub.f32 1.0, %v3510_v50  ;;  %v1239_v26 = vsub.f32 %v1235_v22, %v1227_v13 }
 0x1bd   :  { %v2534_v41 = vpop.eup %2533  ;;  %v1245_v56 = vmul.f32 0.5, %v1241_v8  ;;  %v1257_v33 = vsub.f32 %v1253_v59, %v1225_v5  ;;  %v1265_v15 = vsub.f32 1.0, %v3513_v6  ;;  %v1251_v39 = vmul.f32 0.5, %v1227_v13 }
 0x1be   :  { %v2536_v16 = vpop.eup %2535  ;;  %v1172_v40 = vadd.f32 1.0, %v2534_v41  ;;  %v3524_v32 = vadd.f32 0.16666667, %v1244_v29  ;;  %v3526_v45 = vadd.f32 0.6666667, %v1256_v60  ;;  %v1243_v28 = vmul.f32 0.5, %v1239_v26 }
 0x1bf   :  { %v2538_v2 = vpop.eup %2537  ;;  %v1173_v38 = vadd.f32 1.0, %v2536_v16  ;;  %v3530_v4 = vadd.f32 0.16666667, %v1245_v56  ;;  %v3532_v57 = vadd.f32 0.6666667, %v1257_v33  ;;  %v1255_v1 = vsub.f32 %v1251_v39, %v1223_v14 }
 0x1c0   :  { %v2540_v42 = vpop.eup %2539  ;;  %2541 = vrcp.f32 %v1172_v40  ;;  %v1268_v36 = vsub.f32 %v1264_v55, %v3524_v32  ;;  %v1171_v61 = vadd.f32 1.0, %v2538_v2  ;;  %v3537_v30 = vadd.f32 0.16666667, %v1243_v28 }
 0x1c1   :  { %2543 = vrcp.f32 %v1173_v38  ;;  %v1269_v43 = vsub.f32 %v1265_v15, %v3530_v4  ;;  %v3540_v46 = vadd.f32 0.6666667, %v1255_v1  ;;  %v1263_v19 = vsub.f32 1.0, %v3515_v9 }
 0x1c2   :  { %v3544_v20 = vsub.f32 %v1268_v36, %v3526_v45  ;;  %2545 = vrcp.f32 %v1171_v61  ;;  %v1170_v23 = vadd.f32 1.0, %v2540_v42  ;;  %v3546_v47 = vmul.f32 0.16666667, %v1226_v3 }
 0x1c3   :  { %v3549_v37 = vsub.f32 %v1269_v43, %v3532_v57  ;;  %v1267_v7 = vsub.f32 %v1263_v19, %v3537_v30  ;;  %v1234_v24 = vadd.f32 %v3508_v49, %v1218_v31  ;;  %v1250_v18 = vmul.f32 0.5, %v1226_v3 }
 0x1c4   :  { %2547 = vrcp.f32 %v1170_v23  ;;  %v1262_v53 = vsub.f32 1.0, %v3546_v47  ;;  %v1532_v54 = vsel %vm1528_vm9, %v3544_v20, 0.0  ;;  %vm1569_vm8 = vcmp.eq.f32.partialorder %v3498_v63, 10.0 }
 0x1c5   :  { %v3559_v5 = vsub.f32 %v1267_v7, %v3540_v46  ;;  %v1238_v14 = vsub.f32 %v1234_v24, %v1226_v3  ;;  %v1254_v48 = vsub.f32 %v1250_v18, %v3508_v49  ;;  %v1533_v31 = vsel %vm1529_vm12, %v3549_v37, 0.0 }
 0x1c6   :  { %v1536_v0 = vsel %vm1488_vm13, %v3526_v45, %v1532_v54  ;;  %v1537_v25 = vsel %vm1489_vm4, %v3532_v57, %v1533_v31  ;;  %v1572_v21 = vsel %vm1568_vm1, %v3544_v20, 0.0  ;;  %v1573_v13 = vsel %vm1569_vm8, %v3549_v37, 0.0 }
 0x1c7   :  { %v1242_v22 = vmul.f32 0.5, %v1238_v14  ;;  %v3575_v49 = vadd.f32 0.6666667, %v1254_v48  ;;  %v1540_v34 = vsel %vm1448_vm5, %v3524_v32, %v1536_v0  ;;  %v1541_v52 = vsel %vm4045_vm6, %v3530_v4, %v1537_v25 }
 0x1c8   :  { %v1544_v3 = vsel %vm4044_vm15, %v3510_v50, %v1540_v34  ;;  %v1545_v8 = vsel %vm4043_vm3, %v3513_v6, %v1541_v52  ;;  %v1576_v59 = vsel %vm1528_vm9, %v3526_v45, %v1572_v21  ;;  %v1577_v29 = vsel %vm1529_vm12, %v3532_v57, %v1573_v13 }
 0x1c9   :  { %v3595_v60 = vadd.f32 0.16666667, %v1242_v22  ;;  %v2327_v55 = vpack.c.bf16 %v1545_v8, %v1544_v3  ;;  %v1580_v26 = vsel %vm1488_vm13, %v3524_v32, %v1576_v59  ;;  %v1581_v41 = vsel %vm1489_vm4, %v3530_v4, %v1577_v29 }
 0x1ca   :  { %v1584_v56 = vsel %vm1448_vm5, %v3510_v50, %v1580_v26  ;;  %v1585_v33 = vsel %vm4045_vm6, %v3513_v6, %v1581_v41  ;;  %vm4036_vm2 = vcmp.eq.f32.partialorder %v3496_v62, 2.0  ;;  %vm4037_vm0 = vcmp.eq.f32.partialorder %v3498_v63, 2.0 }
 0x1cb   :  { %v1266_v15 = vsub.f32 %v1262_v53, %v3595_v60  ;;  %2379 = vst [vmem:[#allocation2 + $0x78] sm:$0xff] %v2327_v55   ;;  %v2337_v39 = vpack.c.bf16 %v1585_v33, %v1584_v56  ;;  %vm4033_vm11 = vcmp.eq.f32.partialorder %v3496_v62, 3.0  ;;  %vm4034_vm10 = vcmp.eq.f32.partialorder %v3498_v63, 3.0 }
 0x1cc   :  { %vm4035_vm7 = vcmp.eq.f32.partialorder %v3496_v62, 4.0  ;;  %vm4032_vm14 = vcmp.eq.f32.partialorder %v3498_v63, 4.0  ;;  %vm4038_vm9 = vcmp.eq.f32.partialorder %v3496_v62, 5.0  ;;  %vm4031_vm12 = vcmp.eq.f32.partialorder %v3498_v63, 5.0 }
 0x1cd   :  { %v2542_v16 = vpop.eup %2541  ;;  %v3619_v40 = vsub.f32 %v1266_v15, %v3575_v49  ;;  %2381 = vst [vmem:[#allocation2 + $0x88] sm:$0xff] %v2337_v39   ;;  %v1372_v28 = vsel %vm4038_vm9, %v3544_v20, 0.0  ;;  %v1373_v2 = vsel %vm4031_vm12, %v3549_v37, 0.0  ;;  %vm4040_vm1 = vcmp.eq.f32.partialorder %v3503_v17, 6.0 }
 0x1ce   :  { %v2544_v38 = vpop.eup %2543  ;;  %v1184_v1 = vmul.f32 %v2542_v16, %v3480_v27  ;;  %v1376_v42 = vsel %vm4035_vm7, %v3526_v45, %v1372_v28  ;;  %v1377_v36 = vsel %vm4032_vm14, %v3532_v57, %v1373_v2  ;;  %vm4039_vm8 = vcmp.eq.f32.partialorder %v3500_v10, 6.0 }
 0x1cf   :  { %v2546_v61 = vpop.eup %2545  ;;  %v1185_v43 = vmul.f32 %v2544_v38, %v3482_v58  ;;  %v1380_v19 = vsel %vm4033_vm11, %v3524_v32, %v1376_v42  ;;  %v1381_v27 = vsel %vm4034_vm10, %v3530_v4, %v1377_v36  ;;  %vm4041_vm12 = vcmp.eq.f32.partialorder %v3503_v17, 7.0 }
 0x1d0   :  { %v1183_v23 = vmul.f32 %v2546_v61, %v3484_v12  ;;  %v1384_v7 = vsel %vm4036_vm2, %v3510_v50, %v1380_v19  ;;  %v1385_v58 = vsel %vm4037_vm0, %v3513_v6, %v1381_v27  ;;  %vm1447_vm14 = vcmp.eq.f32.partialorder %v3500_v10, 7.0 }
 0x1d1   :  { %v2548_v24 = vpop.eup %2547  ;;  %v2257_v18 = vpack.c.bf16 %v1185_v43, %v1184_v1  ;;  %v2287_v53 = vpack.c.bf16 %v1385_v58, %v1384_v7  ;;  %vm1486_vm11 = vcmp.eq.f32.partialorder %v3503_v17, 8.0  ;;  %vm4042_vm10 = vcmp.eq.f32.partialorder %v3500_v10, 8.0 }
 0x1d2   :  { %v1182_v54 = vmul.f32 %v2548_v24, %v3486_v11  ;;  %v2488_v12 = vld [vmem:[#allocation2 + $0x78] sm:$0xff]   ;;  %vm1526_vm7 = vcmp.eq.f32.partialorder %v3503_v17, 9.0  ;;  %vm1527_vm2 = vcmp.eq.f32.partialorder %v3500_v10, 9.0  ;;  %vm1566_vm0 = vcmp.eq.f32.partialorder %v3503_v17, 10.0 }
 0x1d3   :  { %2365 = vst [vmem:[#allocation2 + $0x8] sm:$0xff] %v2257_v18   ;;  %2371 = vst [vmem:[#allocation2 + $0x38] sm:$0xff] %v2287_v53   ;;  %v1530_v14 = vsel %vm1526_vm7, %v3619_v40, 0.0  ;;  %vm1567_vm9 = vcmp.eq.f32.partialorder %v3500_v10, 10.0  ;;  %2410 = vmatprep.subr.bf16.mxu0 %v2488_v12  ;;  %v1531_v11 = vsel %vm1527_vm2, %v3559_v5, 0.0  ;;  %v1570_v13 = vsel %vm1566_vm0, %v3619_v40, 0.0 }
 0x1d4   :  { %v2252_v48 = vpack.c.bf16 %v1183_v23, %v1182_v54  ;;  %v2489_v31 = vld [vmem:[#allocation2 + $0x88] sm:$0xff]   ;;  %v1534_v0 = vsel %vm1486_vm11, %v3575_v49, %v1530_v14  ;;  %v1535_v25 = vsel %vm4042_vm10, %v3540_v46, %v1531_v11  ;;  %v1571_v22 = vsel %vm1567_vm9, %v3559_v5, 0.0 }
 0x1d5   :  { %v1538_v21 = vsel %vm4041_vm12, %v3595_v60, %v1534_v0  ;;  %2436 = vmatpush3.bf16.msra.mxu1 %v2489_v31  ;;  %v1539_v34 = vsel %vm1447_vm14, %v3537_v30, %v1535_v25  ;;  %v1574_v3 = vsel %vm1526_vm7, %v3575_v49, %v1570_v13  ;;  %v1575_v8 = vsel %vm1527_vm2, %v3540_v46, %v1571_v22 }
 0x1d6   :  { %2253 = vst [vmem:[#allocation2] sm:$0xff] %v2252_v48   ;;  %v1542_v52 = vsel %vm4040_vm1, %v3546_v47, %v1538_v21  ;;  %v1543_v59 = vsel %vm4039_vm8, %v3515_v9, %v1539_v34  ;;  %2437 = vmatprep.subr.bf16.mxu1 %v2556_v44  ;;  %v1578_v29 = vsel %vm1486_vm11, %v3595_v60, %v1574_v3  ;;  %vm1282_vm0 = vcmp.eq.f32.partialorder %v3503_v17, 2.0 }
 0x1d7   :  { %v1579_v55 = vsel %vm4042_vm10, %v3537_v30, %v1575_v8  ;;  %v2322_v26 = vpack.c.bf16 %v1543_v59, %v1542_v52  ;;  %v1582_v41 = vsel %vm4041_vm12, %v3546_v47, %v1578_v29  ;;  %vm4046_vm2 = vcmp.eq.f32.partialorder %v3500_v10, 2.0 }
 0x1d8   :  { %v1583_v56 = vsel %vm1447_vm14, %v3515_v9, %v1579_v55  ;;  %vm1286_vm7 = vcmp.eq.f32.partialorder %v3503_v17, 3.0  ;;  %vm4047_vm9 = vcmp.eq.f32.partialorder %v3500_v10, 3.0  ;;  %vm1326_vm8 = vcmp.eq.f32.partialorder %v3503_v17, 4.0 }
 0x1d9   :  { %v2332_v44 = vpack.c.bf16 %v1583_v56, %v1582_v41  ;;  %2378 = vst [vmem:[#allocation2 + $0x70] sm:$0xff] %v2322_v26   ;;  %vm1327_vm1 = vcmp.eq.f32.partialorder %v3500_v10, 4.0  ;;  %vm1366_vm12 = vcmp.eq.f32.partialorder %v3503_v17, 5.0  ;;  %vm1367_vm10 = vcmp.eq.f32.partialorder %v3500_v10, 5.0 }
 0x1da   :  { %v2490_v33 = vld [vmem:[#allocation2 + $0x38] sm:$0xff]   ;;  %v1492_v15 = vsel %vm1488_vm13, %v3544_v20, 0.0  ;;  %v1493_v39 = vsel %vm1489_vm4, %v3549_v37, 0.0  ;;  %v1370_v16 = vsel %vm1366_vm12, %v3619_v40, 0.0  ;;  %v1371_v28 = vsel %vm1367_vm10, %v3559_v5, 0.0 }
 0x1db   :  { %2380 = vst [vmem:[#allocation2 + $0x80] sm:$0xff] %v2332_v44   ;;  %2411 = vmatpush3.bf16.msra.mxu0 %v2490_v33  ;;  %v1496_v2 = vsel %vm1448_vm5, %v3526_v45, %v1492_v15  ;;  %v1497_v38 = vsel %vm4045_vm6, %v3532_v57, %v1493_v39  ;;  %v1374_v1 = vsel %vm1326_vm8, %v3575_v49, %v1370_v16  ;;  %vm4143_vm4 = vcmp.eq.f32.partialorder %v3496_v62, 5.0 }
 0x1dc   :  { %v1375_v42 = vsel %vm1327_vm1, %v3540_v46, %v1371_v28  ;;  %v1500_v36 = vsel %vm4044_vm15, %v3524_v32, %v1496_v2  ;;  %v1501_v61 = vsel %vm4043_vm3, %v3530_v4, %v1497_v38  ;;  %v1378_v43 = vsel %vm1286_vm7, %v3595_v60, %v1374_v1 }
 0x1dd   :  { %v1379_v19 = vsel %vm4047_vm9, %v3537_v30, %v1375_v42  ;;  %v1504_v27 = vsel %vm4143_vm4, %v3510_v50, %v1500_v36  ;;  %vm4144_vm13 = vcmp.eq.f32.partialorder %v3498_v63, 5.0  ;;  %v1382_v7 = vsel %vm1282_vm0, %v3546_v47, %v1378_v43 }
 0x1de   :  { %v1505_v23 = vsel %vm4144_vm13, %v3513_v6, %v1501_v61  ;;  %v1383_v58 = vsel %vm4046_vm2, %v3515_v9, %v1379_v19  ;;  %vm1280_vm3 = vcmp.eq.f32.partialorder %v3496_v62, 1.0  ;;  %vm1281_vm15 = vcmp.eq.f32.partialorder %v3498_v63, 1.0 }
 0x1df   :  { %v2317_v24 = vpack.c.bf16 %v1505_v23, %v1504_v27  ;;  %v2282_v18 = vpack.c.bf16 %v1383_v58, %v1382_v7  ;;  %vm4145_vm4 = vcmp.eq.f32.partialorder %v3496_v62, 4.0  ;;  %vm4146_vm13 = vcmp.eq.f32.partialorder %v3498_v63, 4.0 }
 0x1e0   :  { %v1332_v53 = vsel %vm4145_vm4, %v3544_v20, 0.0  ;;  %v1333_v54 = vsel %vm4146_vm13, %v3549_v37, 0.0  ;;  %v2491_v12 = vld [vmem:[#allocation2 + $0x70] sm:$0xff]   ;;  %vm4147_vm6 = vcmp.eq.f32.partialorder %v3496_v62, 3.0  ;;  %vm4148_vm2 = vcmp.eq.f32.partialorder %v3498_v63, 3.0 }
 0x1e1   :  { %2377 = vst [vmem:[#allocation2 + $0x68] sm:$0xff] %v2317_v24   ;;  %v1336_v14 = vsel %vm4147_vm6, %v3526_v45, %v1332_v53  ;;  %v1337_v48 = vsel %vm4148_vm2, %v3532_v57, %v1333_v54  ;;  %v1490_v31 = vsel %vm1486_vm11, %v3619_v40, 0.0  ;;  %2370 = vst [vmem:[#allocation2 + $0x30] sm:$0xff] %v2282_v18   ;;  %vm4149_vm4 = vcmp.eq.f32.partialorder %v3496_v62, 2.0  ;;  %2412 = vmatprep.subr.bf16.mxu0 %v2491_v12 }
 0x1e2   :  { %v2492_v11 = vld [vmem:[#allocation2 + $0x80] sm:$0xff]   ;;  %v1340_v0 = vsel %vm4149_vm4, %v3524_v32, %v1336_v14  ;;  %vm4150_vm13 = vcmp.eq.f32.partialorder %v3498_v63, 2.0  ;;  %vm4151_vm6 = vcmp.eq.f32.partialorder %v3500_v10, 8.0  ;;  %vm4152_vm2 = vcmp.eq.f32.partialorder %v3503_v17, 7.0 }
 0x1e3   :  { %v1341_v25 = vsel %vm4150_vm13, %v3530_v4, %v1337_v48  ;;  %v1491_v21 = vsel %vm4151_vm6, %v3559_v5, 0.0  ;;  %v1494_v13 = vsel %vm4152_vm2, %v3575_v49, %v1490_v31  ;;  %v1344_v22 = vsel %vm1280_vm3, %v3510_v50, %v1340_v0  ;;  %2438 = vmatpush3.bf16.msra.mxu1 %v2492_v11 }
 0x1e4   :  { %v1345_v34 = vsel %vm1281_vm15, %v3513_v6, %v1341_v25  ;;  %v1495_v52 = vsel %vm1447_vm14, %v3540_v46, %v1491_v21  ;;  %vm4153_vm11 = vcmp.eq.f32.partialorder %v3503_v17, 6.0  ;;  %vm4154_vm4 = vcmp.eq.f32.partialorder %v3500_v10, 6.0 }
 0x1e5   :  { %v1498_v3 = vsel %vm4153_vm11, %v3595_v60, %v1494_v13  ;;  %v2277_v8 = vpack.c.bf16 %v1345_v34, %v1344_v22  ;;  %v1499_v59 = vsel %vm4154_vm4, %v3537_v30, %v1495_v52  ;;  %vm4049_vm13 = vcmp.eq.f32.partialorder %v3503_v17, 1.0 }
 0x1e6   :  { %v1502_v29 = vsel %vm1366_vm12, %v3546_v47, %v1498_v3  ;;  %v1503_v55 = vsel %vm1367_vm10, %v3515_v9, %v1499_v59  ;;  %vm4048_vm6 = vcmp.eq.f32.partialorder %v3500_v10, 1.0  ;;  %v1330_v26 = vsel %vm1326_vm8, %v3619_v40, 0.0 }
 0x1e7   :  { %v1331_v41 = vsel %vm1327_vm1, %v3559_v5, 0.0  ;;  %2369 = vst [vmem:[#allocation2 + $0x28] sm:$0xff] %v2277_v8   ;;  %v2312_v56 = vpack.c.bf16 %v1503_v55, %v1502_v29  ;;  %v1334_v44 = vsel %vm1286_vm7, %v3575_v49, %v1330_v26  ;;  %v1452_v15 = vsel %vm1448_vm5, %v3544_v20, 0.0 }
 0x1e8   :  { %v1335_v33 = vsel %vm4047_vm9, %v3540_v46, %v1331_v41  ;;  %v1338_v39 = vsel %vm1282_vm0, %v3595_v60, %v1334_v44  ;;  %vm4155_vm2 = vcmp.eq.f32.partialorder %v3500_v10, 2.0  ;;  %vm4156_vm11 = vcmp.eq.f32.partialorder %v3498_v63, 7.0  ;;  %v2493_v61 = vld [vmem:[#allocation2 + $0x30] sm:$0xff]   ;;  %v2494_v27 = vld [vmem:[#allocation2 + $0x68] sm:$0xff]  }
 0x1e9   :  { %v1339_v16 = vsel %vm4155_vm2, %v3537_v30, %v1335_v33  ;;  %v1453_v28 = vsel %vm4156_vm11, %v3549_v37, 0.0  ;;  %vm4157_vm4 = vcmp.eq.f32.partialorder %v3496_v62, 6.0  ;;  %vm4158_vm9 = vcmask 261120   ;;  %2376 = vst [vmem:[#allocation2 + $0x60] sm:$0xff] %v2312_v56   ;;  %2413 = vmatpush3.bf16.msra.mxu0 %v2493_v61 }
 0x1ea   :  { %v1456_v2 = vsel %vm4157_vm4, %v3526_v45, %v1452_v15  ;;  %2440 = vmatmul.mubr.msk.bf16.vlgmr.msra.gmra.mxu1 %vm4158_vm9, %v3474_v35  ;;  %v1342_v38 = vsel %vm4049_vm13, %v3546_v47, %v1338_v39  ;;  %v1343_v1 = vsel %vm4048_vm6, %v3515_v9, %v1339_v16  ;;  %vm4159_vm5 = vcmp.eq.f32.partialorder %v3498_v63, 6.0  ;;  %2414 = vmatprep.subr.bf16.mxu0 %v2494_v27 }
 0x1eb   :  { %v1457_v42 = vsel %vm4159_vm5, %v3532_v57, %v1453_v28  ;;  %vm4160_vm2 = vcmp.eq.f32.partialorder %v3496_v62, 5.0  ;;  %v2272_v43 = vpack.c.bf16 %v1343_v1, %v1342_v38  ;;  %vm4161_vm9 = vcmp.eq.f32.partialorder %v3498_v63, 5.0 }
 0x1ec   :  { %v1460_v36 = vsel %vm4160_vm2, %v3524_v32, %v1456_v2  ;;  %v1461_v35 = vsel %vm4161_vm9, %v3530_v4, %v1457_v42  ;;  %vm4162_vm11 = vcmp.eq.f32.partialorder %v3496_v62, 4.0  ;;  %vm1276_vm4 = vcmp.eq.f32.partialorder %v3496_v62, 0.0 }
 0x1ed   :  { %v1464_v19 = vsel %vm4162_vm11, %v3510_v50, %v1460_v36  ;;  %vm4163_vm5 = vcmp.eq.f32.partialorder %v3498_v63, 4.0  ;;  %vm1277_vm6 = vcmp.eq.f32.partialorder %v3498_v63, 0.0  ;;  %vm4164_vm2 = vcmp.eq.f32.partialorder %v3496_v62, 3.0  ;;  %2368 = vst [vmem:[#allocation2 + $0x20] sm:$0xff] %v2272_v43  }
 0x1ee   :  { %v1465_v23 = vsel %vm4163_vm5, %v3513_v6, %v1461_v35  ;;  %v1292_v7 = vsel %vm4164_vm2, %v3544_v20, 0.0  ;;  %vm4165_vm9 = vcmp.eq.f32.partialorder %v3498_v63, 3.0  ;;  %vm4166_vm11 = vcmp.eq.f32.partialorder %v3496_v62, 2.0  ;;  %v2495_v11 = vld [vmem:[#allocation2 + $0x28] sm:$0xff]  }
 0x1ef   :  { %v1293_v58 = vsel %vm4165_vm9, %v3549_v37, 0.0  ;;  %v2307_v24 = vpack.c.bf16 %v1465_v23, %v1464_v19  ;;  %v1296_v18 = vsel %vm4166_vm11, %v3526_v45, %v1292_v7  ;;  %vm4167_vm5 = vcmp.eq.f32.partialorder %v3498_v63, 2.0  ;;  %2415 = vmatpush3.bf16.msra.mxu0 %v2495_v11  ;;  %v2503_v35 = vld [vmem:[#allocation2 + $0x8] sm:$0xff]  }
 0x1f0   :  { %v1297_v53 = vsel %vm4167_vm5, %v3532_v57, %v1293_v58  ;;  %vm4168_vm13 = vcmp.eq.f32.partialorder %v3503_v17, 7.0  ;;  %v1300_v12 = vsel %vm1280_vm3, %v3524_v32, %v1296_v18  ;;  %v1451_v48 = vsel %vm1447_vm14, %v3559_v5, 0.0  ;;  %v2496_v3 = vld [vmem:[#allocation2 + $0x60] sm:$0xff]  }
 0x1f1   :  { %v1450_v54 = vsel %vm4168_vm13, %v3619_v40, 0.0  ;;  %v1301_v14 = vsel %vm1281_vm15, %v3530_v4, %v1297_v53  ;;  %vm4169_vm2 = vcmp.eq.f32.partialorder %v3503_v17, 6.0  ;;  %2375 = vst [vmem:[#allocation2 + $0x58] sm:$0xff] %v2307_v24   ;;  %v1304_v0 = vsel %vm1276_vm4, %v3510_v50, %v1300_v12  ;;  %2416 = vmatprep.subr.bf16.mxu0 %v2496_v3 }
 0x1f2   :  { %v1454_v31 = vsel %vm4169_vm2, %v3575_v49, %v1450_v54  ;;  %v1305_v25 = vsel %vm1277_vm6, %v3513_v6, %v1301_v14  ;;  %vm4170_vm15 = vcmp.eq.f32.partialorder %v3500_v10, 6.0  ;;  %vm1274_vm3 = vcmp.eq.f32.partialorder %v3503_v17, 0.0 }
 0x1f3   :  { %v1455_v21 = vsel %vm4170_vm15, %v3540_v46, %v1451_v48  ;;  %v1458_v13 = vsel %vm1366_vm12, %v3595_v60, %v1454_v31  ;;  %v2267_v22 = vpack.c.bf16 %v1305_v25, %v1304_v0  ;;  %vm1275_vm14 = vcmp.eq.f32.partialorder %v3500_v10, 0.0 }
 0x1f4   :  { %v1459_v34 = vsel %vm1367_vm10, %v3537_v30, %v1455_v21  ;;  %v1462_v52 = vsel %vm1326_vm8, %v3546_v47, %v1458_v13  ;;  %v1290_v29 = vsel %vm1286_vm7, %v3619_v40, 0.0  ;;  %vm4171_vm13 = vcmp.eq.f32.partialorder %v3500_v10, 3.0  ;;  %v2497_v15 = vld [vmem:[#allocation2 + $0x20] sm:$0xff]  }
 0x1f5   :  { %v1463_v8 = vsel %vm1327_vm1, %v3515_v9, %v1459_v34  ;;  %2367 = vst [vmem:[#allocation2 + $0x18] sm:$0xff] %v2267_v22   ;;  %v1291_v55 = vsel %vm4171_vm13, %v3559_v5, 0.0  ;;  %vm4172_vm6 = vcmp.eq.f32.partialorder %v3496_v62, 6.0  ;;  %v1294_v41 = vsel %vm1282_vm0, %v3575_v49, %v1290_v29  ;;  %2417 = vmatpush3.bf16.msra.mxu0 %v2497_v15 }
 0x1f6   :  { %v2302_v59 = vpack.c.bf16 %v1463_v8, %v1462_v52  ;;  %v1412_v26 = vsel %vm4172_vm6, %v3544_v20, 0.0  ;;  %vm4173_vm4 = vcmp.eq.f32.partialorder %v3500_v10, 2.0  ;;  %vm4174_vm9 = vcmp.eq.f32.partialorder %v3498_v63, 6.0 }
 0x1f7   :  { %v1295_v56 = vsel %vm4173_vm4, %v3540_v46, %v1291_v55  ;;  %v1413_v44 = vsel %vm4174_vm9, %v3549_v37, 0.0  ;;  %vm4175_vm11 = vcmp.eq.f32.partialorder %v3496_v62, 5.0  ;;  %vm4176_vm5 = vcmp.eq.f32.partialorder %v3503_v17, 1.0 }
 0x1f8   :  { %v1416_v33 = vsel %vm4175_vm11, %v3526_v45, %v1412_v26  ;;  %2374 = vst [vmem:[#allocation2 + $0x50] sm:$0xff] %v2302_v59   ;;  %v1298_v20 = vsel %vm4176_vm5, %v3595_v60, %v1294_v41  ;;  %vm4177_vm0 = vcmp.eq.f32.partialorder %v3500_v10, 1.0  ;;  %vm4178_vm2 = vcmp.eq.f32.partialorder %v3498_v63, 5.0  ;;  %v2498_v38 = vld [vmem:[#allocation2 + $0x58] sm:$0xff]  }
 0x1f9   :  { %v1299_v39 = vsel %vm4177_vm0, %v3537_v30, %v1295_v56  ;;  %v1417_v16 = vsel %vm4178_vm2, %v3532_v57, %v1413_v44  ;;  %vm4179_vm15 = vcmp.eq.f32.partialorder %v3496_v62, 4.0  ;;  %v1302_v45 = vsel %vm1274_vm3, %v3546_v47, %v1298_v20  ;;  %2418 = vmatprep.subr.bf16.mxu0 %v2498_v38 }
 0x1fa   :  { %v1420_v37 = vsel %vm4179_vm15, %v3524_v32, %v1416_v33  ;;  %v1303_v28 = vsel %vm1275_vm14, %v3515_v9, %v1299_v39  ;;  %vm4180_vm13 = vcmp.eq.f32.partialorder %v3498_v63, 4.0  ;;  %vm4181_vm6 = vcmp.eq.f32.partialorder %v3496_v62, 3.0 }
 0x1fb   :  { %v1421_v2 = vsel %vm4180_vm13, %v3530_v4, %v1417_v16  ;;  %v1424_v57 = vsel %vm4181_vm6, %v3510_v50, %v1420_v37  ;;  %v2262_v1 = vpack.c.bf16 %v1303_v28, %v1302_v45  ;;  %vm4182_vm4 = vcmp.eq.f32.partialorder %v3498_v63, 3.0 }
 0x1fc   :  { %v1425_v32 = vsel %vm4182_vm4, %v3513_v6, %v1421_v2  ;;  %vm4183_vm3 = vcmp.eq.f32.partialorder %v3503_v17, 6.0  ;;  %vm4184_vm14 = vcmp.eq.f32.partialorder %v3500_v10, 6.0  ;;  %v2499_v6 = vld [vmem:[#allocation2 + $0x18] sm:$0xff]  }
 0x1fd   :  { %v1410_v42 = vsel %vm4183_vm3, %v3619_v40, 0.0  ;;  %v2297_v36 = vpack.c.bf16 %v1425_v32, %v1424_v57  ;;  %v1411_v4 = vsel %vm4184_vm14, %v3559_v5, 0.0  ;;  %2366 = vst [vmem:[#allocation2 + $0x10] sm:$0xff] %v2262_v1   ;;  %2419 = vmatpush3.bf16.msra.mxu0 %v2499_v6 }
 0x1fe   :  { %v1414_v62 = vsel %vm1366_vm12, %v3575_v49, %v1410_v42  ;;  %v1415_v63 = vsel %vm1367_vm10, %v3540_v46, %v1411_v4  ;;  %vm4185_vm12 = vcmp.eq.f32.partialorder %v3500_v10, 3.0 }
 0x1ff   :  { %v1418_v50 = vsel %vm1326_vm8, %v3595_v60, %v1414_v62  ;;  %2373 = vst [vmem:[#allocation2 + $0x48] sm:$0xff] %v2297_v36   ;;  %v1419_v5 = vsel %vm1327_vm1, %v3537_v30, %v1415_v63  ;;  %v2500_v46 = vld [vmem:[#allocation2 + $0x50] sm:$0xff]   ;;  %v2506_v30 = vld [vmem:[#allocation2] sm:$0xff]  }
 0x200   :  { %v1422_v49 = vsel %vm1286_vm7, %v3546_v47, %v1418_v50  ;;  %v1423_v40 = vsel %vm4185_vm12, %v3515_v9, %v1419_v5  ;;  %2420 = vmatprep.subr.bf16.mxu0 %v2500_v46 }
 0x201   :  { %v2292_v61 = vpack.c.bf16 %v1423_v40, %v1422_v49 }
 0x203   :  { %2372 = vst [vmem:[#allocation2 + $0x40] sm:$0xff] %v2292_v61  }
 0x204   :  { %v2501_v60 = vld [vmem:[#allocation2 + $0x10] sm:$0xff]  }
 0x205   :  { %2421 = vmatpush3.bf16.msra.mxu0 %v2501_v60 }
 0x206   :  { %v2502_v43 = vld [vmem:[#allocation2 + $0x48] sm:$0xff]  }
 0x207   :  { %2422 = vmatprep.subr.bf16.mxu0 %v2502_v43 }
 0x209   :  { %2423 = vmatpush3.bf16.msra.mxu0 %v2503_v35 }
 0x20a   :  { %v2504_v19 = vld [vmem:[#allocation2 + $0x40] sm:$0xff]  }
 0x20b   :  { %2424 = vmatprep.subr.bf16.mxu0 %v2504_v19 }
 0x20d   :  { %2425 = vmatpush3.bf16.msra.mxu0 %v2506_v30 }
 0x210   :  { %1806 = vmatmul.mubr.bf16.vlgmr.msra.gmra.mxu0 %v3476_v51 }
 0x2aa   :  { %v1847_v17 = vpop.f32.mrf.mxu1 }
 0x2ac   :  { %v2441_v10 = vpop.f32.mrf.mxu1 }
 0x2ae   :  { %v1850_v9 = vpop.f32.mrf.mxu1 }
 0x2b0   :  { %v2442_v47 = vpop.f32.mrf.mxu1 }
 0x2d0   :  { %v2426_v27 = vpop.f32.mrf.mxu0 }
 0x2d2   :  { %v2427_v23 = vpop.f32.mrf.mxu0 }
 0x2d3   :  { %v2428_v7 = vadd.f32 %v2427_v23, %v2426_v27 }
 0x2d4   :  { %v2429_v58 = vpop.f32.mrf.mxu0 }
 0x2d5   :  { %v1848_v24 = vadd.f32 %v2428_v7, %v1847_v17 }
 0x2d6   :  { %v2430_v18 = vpop.f32.mrf.mxu0 }
 0x2d7   :  { %1853 = vst [vmem:[%s3995_s5] sm:$0x7] %v1848_v24 }

</bundles_post_ra>
